<compile_context>
chip_gen: v7x
topology: tpu7x:2x2x1
jax: 0.10.0
libtpu: 0.0.40
codegen_flags: <defaults>
</compile_context>

<pallas_src>
import functools

import jax
import jax.numpy as jnp
from jax.experimental import pallas as pl
from jax.experimental.pallas import tpu as pltpu

# ---- small-shape stand-ins for the module's constants (structure preserved) ----
RENDER_WIDTH = 64      # torch module: 400  (conv "height" axis after the permute)
RENDER_HEIGHT = 32     # torch module: 225  (conv "width" axis)
EXTRA_STATE = 8        # extra (non-image) state features
ACTION_DIM = 4
N_FEATURES = 32        # n_features
N_OUTPUT = 1           # output_shape[0]
CNN_OUT = 10           # CNN(10)

IMG_PIXELS = RENDER_WIDTH * RENDER_HEIGHT
FC1_IN = 32 * (RENDER_WIDTH // 4) * (RENDER_HEIGHT // 4)    # torch: 179200
N_INPUT = IMG_PIXELS + EXTRA_STATE + ACTION_DIM             # input_shape[-1]
H1_IN = CNN_OUT + EXTRA_STATE + ACTION_DIM                  # n_input - RW*RH + 10


def _round_up(a, b):
    return (a + b - 1) // b * b


def _vmem_limit_bytes():
    """Generation-aware scoped-VMEM limit: half of physical VMEM, capped at 64 MiB.
    v5e/v6e (128 MiB) -> 64 MiB; v7x (64 MiB) -> 32 MiB.  Actual per-kernel usage
    here is < 8 MiB, so this mostly lifts v5e's 16 MiB default scoped limit."""
    try:
        return min(pltpu.get_tpu_info().vmem_capacity_bytes // 2, 64 * 1024 * 1024)
    except Exception:
        return 32 * 1024 * 1024


_VMEM_LIMIT = _vmem_limit_bytes()
_LARGE_VMEM = _VMEM_LIMIT >= 48 * 1024 * 1024   # v5e / v6e (128 MiB physical)

# Per-generation tile table (real-shape grid counts in the header comment).
_CONV1_TM = 5632 if _LARGE_VMEM else 2816
_CONV2_TM = 2816 if _LARGE_VMEM else 1408
_FC1_TK = 16384 if _LARGE_VMEM else 8192


# =========================== fused conv + ReLU + pool ===========================
def _conv_pool_kernel(x00, x01, x10, x11, w_ref, b_ref, o_ref, *, clamp_inf):
    """4 pooling-corner im2col blocks (K, tm) -> pooled conv output block (Cout, tm)."""
    w = w_ref[...]                                     # (Cout, K)
    tm = o_ref.shape[1]

    def prep(x_ref):
        x = x_ref[...]                                 # (K, tm)
        if clamp_inf:                                  # fused state[isinf]=100000
            x = jnp.where(jnp.isinf(x), jnp.float32(100000.0), x)
        return x

    xs = [prep(x00), prep(x01), prep(x10), prep(x11)]
    if tm % 128 == 0:
        # One wide MXU matmul over the lane-concatenated corners, then 3 VPU maxes.
        big = jnp.concatenate(xs, axis=-1)                               # (K, 4*tm)
        y = jnp.dot(w, big, preferred_element_type=jnp.float32)          # (Cout, 4*tm)
        y = jnp.maximum(jnp.maximum(y[:, :tm], y[:, tm:2 * tm]),
                        jnp.maximum(y[:, 2 * tm:3 * tm], y[:, 3 * tm:]))
    else:                                              # fallback: 4 separate matmuls
        ys = [jnp.dot(w, x, preferred_element_type=jnp.float32) for x in xs]
        y = jnp.maximum(jnp.maximum(ys[0], ys[1]), jnp.maximum(ys[2], ys[3]))

    # max over the 2x2 window commutes with the (shared) bias add and with ReLU.
    o_ref[...] = jnp.maximum(y + b_ref[...], 0.0).astype(o_ref.dtype)


def _im2col_corners_cf(x_cf, Hp, Wp):
    """x_cf: (Cin, H, W) channels-first.  Returns 4 arrays (9*Cin, Hp*Wp), one per
    2x2-pool corner, rows k ordered (tap_dy, tap_dx, cin), cols in pooled raster
    order.  Handles odd H/W with floor semantics (extra row/col dropped), matching
    nn.MaxPool2d(2)."""
    Cin = x_cf.shape[0]
    xp = jnp.pad(x_cf, ((0, 0), (1, 1), (1, 1)))       # conv zero padding=1
    corners = []
    for a in range(2):
        for b in range(2):
            cols = [xp[:, dy + a: dy + a + 2 * Hp: 2, dx + b: dx + b + 2 * Wp: 2]
                    for dy in range(3) for dx in range(3)]     # each (Cin, Hp, Wp)
            patch = jnp.stack(cols, axis=0)                    # (9, Cin, Hp, Wp)
            corners.append(patch.reshape(9 * Cin, Hp * Wp))
    return corners


def conv_relu_pool(x_cf, w, b, *, Hp, Wp, tm, clamp_inf=False,
                   out_dtype=jnp.float32):
    """Fused 3x3/pad=1 conv + ReLU + 2x2 max-pool.  Returns (Cout, Hp*Wp)."""
    Cin = x_cf.shape[0]
    Cout = w.shape[0]
    K = 9 * Cin
    Mp = Hp * Wp
    corners = _im2col_corners_cf(x_cf, Hp, Wp)

    tm = min(tm, _round_up(Mp, 128))                   # lane-aligned tile
    Mpad = _round_up(Mp, tm)
    if Mpad != Mp:
        # The pad fuses into the XLA im2col producer (no extra HBM pass).
        corners = [jnp.pad(c, ((0, 0), (0, Mpad - Mp))) for c in corners]

    out = pl.pallas_call(
        functools.partial(_conv_pool_kernel, clamp_inf=clamp_inf),
        out_shape=jax.ShapeDtypeStruct((Cout, Mpad), out_dtype),
        grid=(Mpad // tm,),
        in_specs=[pl.BlockSpec((K, tm), lambda i: (0, i))] * 4
                 + [pl.BlockSpec((Cout, K), lambda i: (0, 0)),
                    pl.BlockSpec((Cout, 1), lambda i: (0, 0))],
        out_specs=pl.BlockSpec((Cout, tm), lambda i: (0, i)),
        compiler_params=pltpu.CompilerParams(
            dimension_semantics=("parallel",),
            vmem_limit_bytes=_VMEM_LIMIT),
    )(*corners, w, b)
    return out[:, :Mp]


# ====== fc1 (K-tiled GEMV) with fc2 + concat + h1 + h2 + h3 fused in the tail ======
def _fc1_head_kernel(x_ref, w_ref, bfc1_ref,
                     wfc2_ref, bfc2_ref, rem_ref, act_ref,
                     w1c_ref, w1r_ref, w1a_ref, b1_ref,
                     w2_ref, b2_ref, w3_ref, b3_ref,
                     o_ref, acc_ref):
    k = pl.program_id(0)

    @pl.when(k == 0)
    def _():
        acc_ref[...] = jnp.zeros_like(acc_ref)

    # fc1 partial: f32 activation block cast to bf16 to match the bf16 weight stream.
    acc_ref[...] += jnp.dot(x_ref[...].astype(jnp.bfloat16), w_ref[...],
                            preferred_element_type=jnp.float32)

    @pl.when(k == pl.num_programs(0) - 1)
    def _():
        f1 = jnp.maximum(acc_ref[...] + bfc1_ref[...], 0.0)              # fc1 + ReLU
        # CNN.fc2 (no ReLU after fc2 in the torch module)
        cnn = jnp.dot(f1, wfc2_ref[...],
                      preferred_element_type=jnp.float32) + bfc2_ref[...]
        # fused state[isinf(state)] = 100000 for the remaining (non-image) slice
        rem = rem_ref[...]
        rem = jnp.where(jnp.isinf(rem), jnp.float32(100000.0), rem)
        # concat([cnn, remaining, action]) @ w_h1  ==  sum of row-block matmuls
        # (matches torch cat order: cnn output, then remaining_state, then action).
        h1 = (jnp.dot(cnn, w1c_ref[...], preferred_element_type=jnp.float32)
              + jnp.dot(rem, w1r_ref[...], preferred_element_type=jnp.float32)
              + jnp.dot(act_ref[...], w1a_ref[...], preferred_element_type=jnp.float32)
              + b1_ref[...])
        h1 = jnp.maximum(h1, 0.0)
        h2 = jnp.maximum(jnp.dot(h1, w2_ref[...],
                                 preferred_element_type=jnp.float32) + b2_ref[...], 0.0)
        o_ref[...] = jnp.dot(h2, w3_ref[...],
                             preferred_element_type=jnp.float32) + b3_ref[...]


def _pick_k_tile(K, t_max):
    """Largest lane-aligned K tile <= t_max, preferring exact divisors of K so the
    large fc1 weight never needs an XLA-side pad (which would copy the whole array)."""
    t_max = min(t_max, _round_up(K, 128))
    for t in range(t_max, 127, -128):
        if K % t == 0:
            return t
    return t_max


def fc1_head(flat, remaining, action, p, *, tk=_FC1_TK):
    """q = h3(relu(h2(relu(h1(cat([fc2(relu(flat@w_fc1+b)), rem, act]))))))."""
    K = flat.shape[1]
    w = p["w_fc1"]                                  # (K, 128) bf16
    N = w.shape[1]
    tk = _pick_k_tile(K, tk)
    Kpad = _round_up(K, tk)
    if Kpad != K:                                   # only if K has no aligned divisor
        flat = jnp.pad(flat, ((0, 0), (0, Kpad - K)))
        w = jnp.pad(w, ((0, Kpad - K), (0, 0)))

    w1 = p["w_h1"]                                  # (H1_IN, N_FEATURES), rows = [cnn|rem|act]
    w1c = w1[:CNN_OUT]
    w1r = w1[CNN_OUT:CNN_OUT + EXTRA_STATE]
    w1a = w1[CNN_OUT + EXTRA_STATE:]

    consts = (p["b_fc1"], p["w_fc2"], p["b_fc2"],
              remaining.astype(jnp.float32), action.astype(jnp.float32),
              w1c, w1r, w1a, p["b_h1"], p["w_h2"], p["b_h2"], p["w_h3"], p["b_h3"])

    def _const_spec(arr):                           # tiny, stays VMEM-resident
        return pl.BlockSpec(arr.shape, lambda k: (0, 0))

    return pl.pallas_call(
        _fc1_head_kernel,
        out_shape=jax.ShapeDtypeStruct((1, N_OUTPUT), jnp.float32),
        grid=(Kpad // tk,),
        in_specs=[pl.BlockSpec((1, tk), lambda k: (0, k)),
                  pl.BlockSpec((tk, N), lambda k: (k, 0))]
                 + [_const_spec(a) for a in consts],
        out_specs=pl.BlockSpec((1, N_OUTPUT), lambda k: (0, 0)),
        scratch_shapes=[pltpu.VMEM((1, N), jnp.float32)],
        compiler_params=pltpu.CompilerParams(
            dimension_semantics=("arbitrary",),
            vmem_limit_bytes=_VMEM_LIMIT),
    )(flat, w, *consts)


# ================================ forward pass ================================
def critic_forward(state, action, params):
    """state: (1, IMG_PIXELS + EXTRA_STATE), action: (1, ACTION_DIM) -> scalar q."""
    state = state.astype(jnp.float32)
    img_flat = state[:, :IMG_PIXELS]
    remaining = state[:, IMG_PIXELS:]
    # torch: tmp.view(RW, RH, 1).permute(3,2,0,1) -> conv input (1, 1, RW, RH),
    # i.e. a channels-first (Cin=1, H=RW, W=RH) image = the row-major reshape.
    x_cf = img_flat.reshape(1, RENDER_WIDTH, RENDER_HEIGHT)

    Hp1, Wp1 = RENDER_WIDTH // 2, RENDER_HEIGHT // 2
    y1 = conv_relu_pool(x_cf, params["w_conv1"], params["b_conv1"],
                        Hp=Hp1, Wp=Wp1, tm=_CONV1_TM, clamp_inf=True,
                        out_dtype=jnp.bfloat16)                      # (16, Hp1*Wp1)
    y1 = y1.reshape(16, Hp1, Wp1)

    Hp2, Wp2 = Hp1 // 2, Wp1 // 2
    y2 = conv_relu_pool(y1, params["w_conv2"], params["b_conv2"],
                        Hp=Hp2, Wp=Wp2, tm=_CONV2_TM,
                        out_dtype=jnp.float32)                       # (32, Hp2*Wp2)

    # torch reshape(x, (-1, 179200)) flattens NCHW in (C, H, W) order -> plain reshape.
    flat = y2.reshape(1, 32 * Hp2 * Wp2)                             # (1, FC1_IN)

    q = fc1_head(flat, remaining, action, params)                    # (1, 1)
    return jnp.squeeze(q)


# =============================== parameter init ===============================
def xavier_uniform(key, fan_in, fan_out, gain=1.0):
    a = gain * jnp.sqrt(6.0 / (fan_in + fan_out))
    return jax.random.uniform(key, (fan_in, fan_out), jnp.float32, -a, a)


def init_params(key):
    ks = jax.random.split(key, 8)
    relu_gain = jnp.sqrt(2.0)
    p = {}
    # conv weights in im2col layout (Cout, 9*Cin), K ordered (tap_dy, tap_dx, cin);
    # this corresponds to torch (Cout, Cin, 3, 3).permute(0, 2, 3, 1).reshape(Cout, 9*Cin).
    p["w_conv1"] = 0.1 * jax.random.normal(ks[0], (16, 9 * 1), jnp.float32)
    p["b_conv1"] = jnp.zeros((16, 1), jnp.float32)
    # conv2 operands streamed in bf16 (f32 accumulation) to halve the HBM traffic of
    # the XLA-materialized im2col corner streams (stopgap for the halo rewrite).
    p["w_conv2"] = (0.05 * jax.random.normal(ks[1], (32, 9 * 16), jnp.float32)
                    ).astype(jnp.bfloat16)
    p["b_conv2"] = jnp.zeros((32, 1), jnp.float32)
    # fc1 weight in bf16: the fc1 GEMV is HBM-weight-stream bound -> halves traffic.
    p["w_fc1"] = xavier_uniform(ks[2], FC1_IN, 128).astype(jnp.bfloat16)
    p["b_fc1"] = jnp.zeros((1, 128), jnp.float32)
    p["w_fc2"] = xavier_uniform(ks[3], 128, CNN_OUT)
    p["b_fc2"] = jnp.zeros((1, CNN_OUT), jnp.float32)
    p["w_h1"] = xavier_uniform(ks[4], H1_IN, N_FEATURES, relu_gain)
    p["b_h1"] = jnp.zeros((1, N_FEATURES), jnp.float32)
    p["w_h2"] = xavier_uniform(ks[5], N_FEATURES, N_FEATURES, relu_gain)
    p["b_h2"] = jnp.zeros((1, N_FEATURES), jnp.float32)
    p["w_h3"] = xavier_uniform(ks[6], N_FEATURES, N_OUTPUT, 1.0)
    p["b_h3"] = jnp.zeros((1, N_OUTPUT), jnp.float32)
    return p


if __name__ == "__main__":
    key = jax.random.PRNGKey(0)
    k_param, k_state, k_action = jax.random.split(key, 3)
    params = init_params(k_param)

    state = jax.random.normal(k_state, (1, IMG_PIXELS + EXTRA_STATE), jnp.float32)
    # exercise the isinf -> 100000 path in both the image and the remaining slices
    state = state.at[0, 5].set(jnp.inf).at[0, IMG_PIXELS + 2].set(-jnp.inf)
    action = jax.random.normal(k_action, (1, ACTION_DIM), jnp.float32)

    critic = jax.jit(critic_forward)
    q = critic(state, action, params)
    jax.block_until_ready(q)
    assert q.shape == () and q.dtype == jnp.float32
    assert bool(jnp.isfinite(q))
    print("KERNEL_OK")
</pallas_src>

<mosaic_0001>
module attributes {stable_mosaic.version = 11 : i64} {
  func.func @_conv_pool_kernel(%arg0: i32, %arg1: memref<9x512xf32, #tpu.memory_space<vmem>>, %arg2: memref<9x512xf32, #tpu.memory_space<vmem>>, %arg3: memref<9x512xf32, #tpu.memory_space<vmem>>, %arg4: memref<9x512xf32, #tpu.memory_space<vmem>>, %arg5: memref<16x9xf32, #tpu.memory_space<vmem>>, %arg6: memref<16x1xf32, #tpu.memory_space<vmem>>, %arg7: memref<16x512xbf16, #tpu.memory_space<vmem>>) attributes {dimension_semantics = [#tpu.dimension_semantics<parallel>], iteration_bounds = array<i64: 1>, scalar_prefetch = 0 : i64, scratch_operands = 0 : i64, tpu.core_type = #tpu.core_type<tc>, window_params = [{transform_indices = @transform_0, window_bounds = array<i64: 9, 512>}, {transform_indices = @transform_1, window_bounds = array<i64: 9, 512>}, {transform_indices = @transform_2, window_bounds = array<i64: 9, 512>}, {transform_indices = @transform_3, window_bounds = array<i64: 9, 512>}, {pipeline_mode = #tpu.pipeline_mode<synchronous>, transform_indices = @transform_4, window_bounds = array<i64: 16, 9>}, {pipeline_mode = #tpu.pipeline_mode<synchronous>, transform_indices = @transform_5, window_bounds = array<i64: 16, 1>}, {transform_indices = @transform_6, window_bounds = array<i64: 16, 512>}]} {
    %c0 = arith.constant 0 : index
    %c0_0 = arith.constant 0 : index
    %0 = vector.load %arg5[%c0, %c0_0] : memref<16x9xf32, #tpu.memory_space<vmem>>, vector<16x9xf32>
    %c0_1 = arith.constant 0 : index
    %c0_2 = arith.constant 0 : index
    %1 = vector.load %arg1[%c0_1, %c0_2] : memref<9x512xf32, #tpu.memory_space<vmem>>, vector<9x512xf32>
    %2 = math.absf %1 : vector<9x512xf32>
    %cst = arith.constant 0x7F800000 : f32
    %3 = vector.broadcast %cst : f32 to vector<9x512xf32>
    %4 = arith.cmpf oeq, %2, %3 : vector<9x512xf32>
    %cst_3 = arith.constant 1.000000e+05 : f32
    %5 = vector.broadcast %cst_3 : f32 to vector<9x512xf32>
    %6 = arith.select %4, %5, %1 : vector<9x512xi1>, vector<9x512xf32>
    %c0_4 = arith.constant 0 : index
    %c0_5 = arith.constant 0 : index
    %7 = vector.load %arg2[%c0_4, %c0_5] : memref<9x512xf32, #tpu.memory_space<vmem>>, vector<9x512xf32>
    %8 = math.absf %7 : vector<9x512xf32>
    %cst_6 = arith.constant 0x7F800000 : f32
    %9 = vector.broadcast %cst_6 : f32 to vector<9x512xf32>
    %10 = arith.cmpf oeq, %8, %9 : vector<9x512xf32>
    %cst_7 = arith.constant 1.000000e+05 : f32
    %11 = vector.broadcast %cst_7 : f32 to vector<9x512xf32>
    %12 = arith.select %10, %11, %7 : vector<9x512xi1>, vector<9x512xf32>
    %c0_8 = arith.constant 0 : index
    %c0_9 = arith.constant 0 : index
    %13 = vector.load %arg3[%c0_8, %c0_9] : memref<9x512xf32, #tpu.memory_space<vmem>>, vector<9x512xf32>
    %14 = math.absf %13 : vector<9x512xf32>
    %cst_10 = arith.constant 0x7F800000 : f32
    %15 = vector.broadcast %cst_10 : f32 to vector<9x512xf32>
    %16 = arith.cmpf oeq, %14, %15 : vector<9x512xf32>
    %cst_11 = arith.constant 1.000000e+05 : f32
    %17 = vector.broadcast %cst_11 : f32 to vector<9x512xf32>
    %18 = arith.select %16, %17, %13 : vector<9x512xi1>, vector<9x512xf32>
    %c0_12 = arith.constant 0 : index
    %c0_13 = arith.constant 0 : index
    %19 = vector.load %arg4[%c0_12, %c0_13] : memref<9x512xf32, #tpu.memory_space<vmem>>, vector<9x512xf32>
    %20 = math.absf %19 : vector<9x512xf32>
    %cst_14 = arith.constant 0x7F800000 : f32
    %21 = vector.broadcast %cst_14 : f32 to vector<9x512xf32>
    %22 = arith.cmpf oeq, %20, %21 : vector<9x512xf32>
    %cst_15 = arith.constant 1.000000e+05 : f32
    %23 = vector.broadcast %cst_15 : f32 to vector<9x512xf32>
    %24 = arith.select %22, %23, %19 : vector<9x512xi1>, vector<9x512xf32>
    %25 = tpu.concatenate %6, %12, %18, %24 in 1 : vector<9x512xf32>, vector<9x512xf32>, vector<9x512xf32>, vector<9x512xf32> -> vector<9x2048xf32>
    %cst_16 = arith.constant dense<0.000000e+00> : vector<16x2048xf32>
    %26 = tpu.matmul %0, %25, %cst_16 {dimension_numbers = #tpu.dot_dimension_numbers<[1], [0], [0], [1], [0, 0, 1, 1], [], []>} : vector<16x9xf32>, vector<9x2048xf32>, vector<16x2048xf32> -> vector<16x2048xf32>
    %27 = vector.extract_strided_slice %26 {offsets = [0, 0], sizes = [16, 512], strides = [1, 1]} : vector<16x2048xf32> to vector<16x512xf32>
    %28 = vector.extract_strided_slice %26 {offsets = [0, 512], sizes = [16, 512], strides = [1, 1]} : vector<16x2048xf32> to vector<16x512xf32>
    %29 = arith.maximumf %27, %28 : vector<16x512xf32>
    %30 = vector.extract_strided_slice %26 {offsets = [0, 1024], sizes = [16, 512], strides = [1, 1]} : vector<16x2048xf32> to vector<16x512xf32>
    %31 = vector.extract_strided_slice %26 {offsets = [0, 1536], sizes = [16, 512], strides = [1, 1]} : vector<16x2048xf32> to vector<16x512xf32>
    %32 = arith.maximumf %30, %31 : vector<16x512xf32>
    %33 = arith.maximumf %29, %32 : vector<16x512xf32>
    %c0_17 = arith.constant 0 : index
    %c0_18 = arith.constant 0 : index
    %34 = vector.load %arg6[%c0_17, %c0_18] : memref<16x1xf32, #tpu.memory_space<vmem>>, vector<16x1xf32>
    %35 = vector.broadcast %34 : vector<16x1xf32> to vector<16x512xf32>
    %36 = arith.addf %33, %35 : vector<16x512xf32>
    %cst_19 = arith.constant 0.000000e+00 : f32
    %37 = vector.broadcast %cst_19 : f32 to vector<16x512xf32>
    %38 = arith.maximumf %36, %37 : vector<16x512xf32>
    %39 = arith.truncf %38 : vector<16x512xf32> to vector<16x512xbf16>
    %c0_20 = arith.constant 0 : index
    %c0_21 = arith.constant 0 : index
    %40 = vector.load %arg7[%c0_20, %c0_21] : memref<16x512xbf16, #tpu.memory_space<vmem>>, vector<16x512xbf16>
    tpu.vector_store %arg7[%c0_20, %c0_21], %39 {strides = array<i32>} : memref<16x512xbf16, #tpu.memory_space<vmem>>, vector<16x512xbf16>,
    return
  }
  func.func @transform_0(%arg0: i32) -> (i32, i32) {
    %c0_i32 = arith.constant 0 : i32
    %c0_i32_0 = arith.constant 0 : i32
    return %c0_i32, %arg0 : i32, i32
  }
  func.func @transform_1(%arg0: i32) -> (i32, i32) {
    %c0_i32 = arith.constant 0 : i32
    %c0_i32_0 = arith.constant 0 : i32
    return %c0_i32, %arg0 : i32, i32
  }
  func.func @transform_2(%arg0: i32) -> (i32, i32) {
    %c0_i32 = arith.constant 0 : i32
    %c0_i32_0 = arith.constant 0 : i32
    return %c0_i32, %arg0 : i32, i32
  }
  func.func @transform_3(%arg0: i32) -> (i32, i32) {
    %c0_i32 = arith.constant 0 : i32
    %c0_i32_0 = arith.constant 0 : i32
    return %c0_i32, %arg0 : i32, i32
  }
  func.func @transform_4(%arg0: i32) -> (i32, i32) {
    %c0_i32 = arith.constant 0 : i32
    %c0_i32_0 = arith.constant 0 : i32
    %c0_i32_1 = arith.constant 0 : i32
    return %c0_i32, %c0_i32_0 : i32, i32
  }
  func.func @transform_5(%arg0: i32) -> (i32, i32) {
    %c0_i32 = arith.constant 0 : i32
    %c0_i32_0 = arith.constant 0 : i32
    %c0_i32_1 = arith.constant 0 : i32
    return %c0_i32, %c0_i32_0 : i32, i32
  }
  func.func @transform_6(%arg0: i32) -> (i32, i32) {
    %c0_i32 = arith.constant 0 : i32
    %c0_i32_0 = arith.constant 0 : i32
    return %c0_i32, %arg0 : i32, i32
  }
}

module attributes {stable_mosaic.version = 11 : i64} {
  func.func @_conv_pool_kernel(%arg0: i32, %arg1: memref<144x128xbf16, #tpu.memory_space<vmem>>, %arg2: memref<144x128xbf16, #tpu.memory_space<vmem>>, %arg3: memref<144x128xbf16, #tpu.memory_space<vmem>>, %arg4: memref<144x128xbf16, #tpu.memory_space<vmem>>, %arg5: memref<32x144xbf16, #tpu.memory_space<vmem>>, %arg6: memref<32x1xf32, #tpu.memory_space<vmem>>, %arg7: memref<32x128xf32, #tpu.memory_space<vmem>>) attributes {dimension_semantics = [#tpu.dimension_semantics<parallel>], iteration_bounds = array<i64: 1>, scalar_prefetch = 0 : i64, scratch_operands = 0 : i64, tpu.core_type = #tpu.core_type<tc>, window_params = [{transform_indices = @transform_0, window_bounds = array<i64: 144, 128>}, {transform_indices = @transform_1, window_bounds = array<i64: 144, 128>}, {transform_indices = @transform_2, window_bounds = array<i64: 144, 128>}, {transform_indices = @transform_3, window_bounds = array<i64: 144, 128>}, {pipeline_mode = #tpu.pipeline_mode<synchronous>, transform_indices = @transform_4, window_bounds = array<i64: 32, 144>}, {pipeline_mode = #tpu.pipeline_mode<synchronous>, transform_indices = @transform_5, window_bounds = array<i64: 32, 1>}, {transform_indices = @transform_6, window_bounds = array<i64: 32, 128>}]} {
    %c0 = arith.constant 0 : index
    %c0_0 = arith.constant 0 : index
    %0 = vector.load %arg5[%c0, %c0_0] : memref<32x144xbf16, #tpu.memory_space<vmem>>, vector<32x144xbf16>
    %c0_1 = arith.constant 0 : index
    %c0_2 = arith.constant 0 : index
    %1 = vector.load %arg1[%c0_1, %c0_2] : memref<144x128xbf16, #tpu.memory_space<vmem>>, vector<144x128xbf16>
    %c0_3 = arith.constant 0 : index
    %c0_4 = arith.constant 0 : index
    %2 = vector.load %arg2[%c0_3, %c0_4] : memref<144x128xbf16, #tpu.memory_space<vmem>>, vector<144x128xbf16>
    %c0_5 = arith.constant 0 : index
    %c0_6 = arith.constant 0 : index
    %3 = vector.load %arg3[%c0_5, %c0_6] : memref<144x128xbf16, #tpu.memory_space<vmem>>, vector<144x128xbf16>
    %c0_7 = arith.constant 0 : index
    %c0_8 = arith.constant 0 : index
    %4 = vector.load %arg4[%c0_7, %c0_8] : memref<144x128xbf16, #tpu.memory_space<vmem>>, vector<144x128xbf16>
    %5 = tpu.concatenate %1, %2, %3, %4 in 1 : vector<144x128xbf16>, vector<144x128xbf16>, vector<144x128xbf16>, vector<144x128xbf16> -> vector<144x512xbf16>
    %cst = arith.constant dense<0.000000e+00> : vector<32x512xf32>
    %6 = tpu.matmul %0, %5, %cst {dimension_numbers = #tpu.dot_dimension_numbers<[1], [0], [0], [1], [0, 0, 1, 1], [], []>} : vector<32x144xbf16>, vector<144x512xbf16>, vector<32x512xf32> -> vector<32x512xf32>
    %7 = vector.extract_strided_slice %6 {offsets = [0, 0], sizes = [32, 128], strides = [1, 1]} : vector<32x512xf32> to vector<32x128xf32>
    %8 = vector.extract_strided_slice %6 {offsets = [0, 128], sizes = [32, 128], strides = [1, 1]} : vector<32x512xf32> to vector<32x128xf32>
    %9 = arith.maximumf %7, %8 : vector<32x128xf32>
    %10 = vector.extract_strided_slice %6 {offsets = [0, 256], sizes = [32, 128], strides = [1, 1]} : vector<32x512xf32> to vector<32x128xf32>
    %11 = vector.extract_strided_slice %6 {offsets = [0, 384], sizes = [32, 128], strides = [1, 1]} : vector<32x512xf32> to vector<32x128xf32>
    %12 = arith.maximumf %10, %11 : vector<32x128xf32>
    %13 = arith.maximumf %9, %12 : vector<32x128xf32>
    %c0_9 = arith.constant 0 : index
    %c0_10 = arith.constant 0 : index
    %14 = vector.load %arg6[%c0_9, %c0_10] : memref<32x1xf32, #tpu.memory_space<vmem>>, vector<32x1xf32>
    %15 = vector.broadcast %14 : vector<32x1xf32> to vector<32x128xf32>
    %16 = arith.addf %13, %15 : vector<32x128xf32>
    %cst_11 = arith.constant 0.000000e+00 : f32
    %17 = vector.broadcast %cst_11 : f32 to vector<32x128xf32>
    %18 = arith.maximumf %16, %17 : vector<32x128xf32>
    %c0_12 = arith.constant 0 : index
    %c0_13 = arith.constant 0 : index
    %19 = vector.load %arg7[%c0_12, %c0_13] : memref<32x128xf32, #tpu.memory_space<vmem>>, vector<32x128xf32>
    tpu.vector_store %arg7[%c0_12, %c0_13], %18 {strides = array<i32>} : memref<32x128xf32, #tpu.memory_space<vmem>>, vector<32x128xf32>,
    return
  }
  func.func @transform_0(%arg0: i32) -> (i32, i32) {
    %c0_i32 = arith.constant 0 : i32
    %c0_i32_0 = arith.constant 0 : i32
    return %c0_i32, %arg0 : i32, i32
  }
  func.func @transform_1(%arg0: i32) -> (i32, i32) {
    %c0_i32 = arith.constant 0 : i32
    %c0_i32_0 = arith.constant 0 : i32
    return %c0_i32, %arg0 : i32, i32
  }
  func.func @transform_2(%arg0: i32) -> (i32, i32) {
    %c0_i32 = arith.constant 0 : i32
    %c0_i32_0 = arith.constant 0 : i32
    return %c0_i32, %arg0 : i32, i32
  }
  func.func @transform_3(%arg0: i32) -> (i32, i32) {
    %c0_i32 = arith.constant 0 : i32
    %c0_i32_0 = arith.constant 0 : i32
    return %c0_i32, %arg0 : i32, i32
  }
  func.func @transform_4(%arg0: i32) -> (i32, i32) {
    %c0_i32 = arith.constant 0 : i32
    %c0_i32_0 = arith.constant 0 : i32
    %c0_i32_1 = arith.constant 0 : i32
    return %c0_i32, %c0_i32_0 : i32, i32
  }
  func.func @transform_5(%arg0: i32) -> (i32, i32) {
    %c0_i32 = arith.constant 0 : i32
    %c0_i32_0 = arith.constant 0 : i32
    %c0_i32_1 = arith.constant 0 : i32
    return %c0_i32, %c0_i32_0 : i32, i32
  }
  func.func @transform_6(%arg0: i32) -> (i32, i32) {
    %c0_i32 = arith.constant 0 : i32
    %c0_i32_0 = arith.constant 0 : i32
    return %c0_i32, %arg0 : i32, i32
  }
}

module attributes {stable_mosaic.version = 11 : i64} {
  func.func @_fc1_head_kernel(%arg0: i32, %arg1: memref<1x4096xf32, #tpu.memory_space<vmem>>, %arg2: memref<4096x128xbf16, #tpu.memory_space<vmem>>, %arg3: memref<1x128xf32, #tpu.memory_space<vmem>>, %arg4: memref<128x10xf32, #tpu.memory_space<vmem>>, %arg5: memref<1x10xf32, #tpu.memory_space<vmem>>, %arg6: memref<1x8xf32, #tpu.memory_space<vmem>>, %arg7: memref<1x4xf32, #tpu.memory_space<vmem>>, %arg8: memref<10x32xf32, #tpu.memory_space<vmem>>, %arg9: memref<8x32xf32, #tpu.memory_space<vmem>>, %arg10: memref<4x32xf32, #tpu.memory_space<vmem>>, %arg11: memref<1x32xf32, #tpu.memory_space<vmem>>, %arg12: memref<32x32xf32, #tpu.memory_space<vmem>>, %arg13: memref<1x32xf32, #tpu.memory_space<vmem>>, %arg14: memref<32x1xf32, #tpu.memory_space<vmem>>, %arg15: memref<1x1xf32, #tpu.memory_space<vmem>>, %arg16: memref<1x1xf32, #tpu.memory_space<vmem>>, %arg17: memref<1x128xf32, #tpu.memory_space<vmem>>) attributes {dimension_semantics = [#tpu.dimension_semantics<arbitrary>], iteration_bounds = array<i64: 1>, scalar_prefetch = 0 : i64, scratch_operands = 1 : i64, tpu.core_type = #tpu.core_type<tc>, window_params = [{transform_indices = @transform_0, window_bounds = array<i64: 1, 4096>}, {transform_indices = @transform_1, window_bounds = array<i64: 4096, 128>}, {pipeline_mode = #tpu.pipeline_mode<synchronous>, transform_indices = @transform_2, window_bounds = array<i64: 1, 128>}, {pipeline_mode = #tpu.pipeline_mode<synchronous>, transform_indices = @transform_3, window_bounds = array<i64: 128, 10>}, {pipeline_mode = #tpu.pipeline_mode<synchronous>, transform_indices = @transform_4, window_bounds = array<i64: 1, 10>}, {pipeline_mode = #tpu.pipeline_mode<synchronous>, transform_indices = @transform_5, window_bounds = array<i64: 1, 8>}, {pipeline_mode = #tpu.pipeline_mode<synchronous>, transform_indices = @transform_6, window_bounds = array<i64: 1, 4>}, {pipeline_mode = #tpu.pipeline_mode<synchronous>, transform_indices = @transform_7, window_bounds = array<i64: 10, 32>}, {pipeline_mode = #tpu.pipeline_mode<synchronous>, transform_indices = @transform_8, window_bounds = array<i64: 8, 32>}, {pipeline_mode = #tpu.pipeline_mode<synchronous>, transform_indices = @transform_9, window_bounds = array<i64: 4, 32>}, {pipeline_mode = #tpu.pipeline_mode<synchronous>, transform_indices = @transform_10, window_bounds = array<i64: 1, 32>}, {pipeline_mode = #tpu.pipeline_mode<synchronous>, transform_indices = @transform_11, window_bounds = array<i64: 32, 32>}, {pipeline_mode = #tpu.pipeline_mode<synchronous>, transform_indices = @transform_12, window_bounds = array<i64: 1, 32>}, {pipeline_mode = #tpu.pipeline_mode<synchronous>, transform_indices = @transform_13, window_bounds = array<i64: 32, 1>}, {pipeline_mode = #tpu.pipeline_mode<synchronous>, transform_indices = @transform_14, window_bounds = array<i64: 1, 1>}, {pipeline_mode = #tpu.pipeline_mode<synchronous>, transform_indices = @transform_15, window_bounds = array<i64: 1, 1>}]} {
    %c0_i32 = arith.constant 0 : i32
    %0 = arith.cmpi eq, %arg0, %c0_i32 : i32
    %1 = arith.extui %0 : i1 to i32
    %c0_i32_0 = arith.constant 0 : i32
    %2 = arith.cmpi ne, %1, %c0_i32_0 : i32
    scf.if %2 {
      %cst_10 = arith.constant 0.000000e+00 : f32
      %13 = vector.broadcast %cst_10 : f32 to vector<1x128xf32>
      %c0_11 = arith.constant 0 : index
      %c0_12 = arith.constant 0 : index
      %14 = vector.load %arg17[%c0_11, %c0_12] : memref<1x128xf32, #tpu.memory_space<vmem>>, vector<1x128xf32>
      tpu.vector_store %arg17[%c0_11, %c0_12], %13 {strides = array<i32>} : memref<1x128xf32, #tpu.memory_space<vmem>>, vector<1x128xf32>,
    } else {
    }
    %c0 = arith.constant 0 : index
    %c0_1 = arith.constant 0 : index
    %3 = vector.load %arg17[%c0, %c0_1] : memref<1x128xf32, #tpu.memory_space<vmem>>, vector<1x128xf32>
    %c0_2 = arith.constant 0 : index
    %c0_3 = arith.constant 0 : index
    %4 = vector.load %arg1[%c0_2, %c0_3] : memref<1x4096xf32, #tpu.memory_space<vmem>>, vector<1x4096xf32>
    %5 = arith.truncf %4 : vector<1x4096xf32> to vector<1x4096xbf16>
    %c0_4 = arith.constant 0 : index
    %c0_5 = arith.constant 0 : index
    %6 = vector.load %arg2[%c0_4, %c0_5] : memref<4096x128xbf16, #tpu.memory_space<vmem>>, vector<4096x128xbf16>
    %cst = arith.constant dense<0.000000e+00> : vector<1x128xf32>
    %7 = tpu.matmul %5, %6, %cst {dimension_numbers = #tpu.dot_dimension_numbers<[1], [0], [0], [1], [0, 0, 1, 1], [], []>} : vector<1x4096xbf16>, vector<4096x128xbf16>, vector<1x128xf32> -> vector<1x128xf32>
    %8 = arith.addf %3, %7 : vector<1x128xf32>
    %c0_6 = arith.constant 0 : index
    %c0_7 = arith.constant 0 : index
    %9 = vector.load %arg17[%c0_6, %c0_7] : memref<1x128xf32, #tpu.memory_space<vmem>>, vector<1x128xf32>
    tpu.vector_store %arg17[%c0_6, %c0_7], %8 {strides = array<i32>} : memref<1x128xf32, #tpu.memory_space<vmem>>, vector<1x128xf32>,
    %c0_i32_8 = arith.constant 0 : i32
    %10 = arith.cmpi eq, %arg0, %c0_i32_8 : i32
    %11 = arith.extui %10 : i1 to i32
    %c0_i32_9 = arith.constant 0 : i32
    %12 = arith.cmpi ne, %11, %c0_i32_9 : i32
    scf.if %12 {
      %c0_10 = arith.constant 0 : index
      %c0_11 = arith.constant 0 : index
      %13 = vector.load %arg17[%c0_10, %c0_11] : memref<1x128xf32, #tpu.memory_space<vmem>>, vector<1x128xf32>
      %c0_12 = arith.constant 0 : index
      %c0_13 = arith.constant 0 : index
      %14 = vector.load %arg3[%c0_12, %c0_13] : memref<1x128xf32, #tpu.memory_space<vmem>>, vector<1x128xf32>
      %15 = arith.addf %13, %14 : vector<1x128xf32>
      %cst_14 = arith.constant 0.000000e+00 : f32
      %16 = vector.broadcast %cst_14 : f32 to vector<1x128xf32>
      %17 = arith.maximumf %15, %16 : vector<1x128xf32>
      %c0_15 = arith.constant 0 : index
      %c0_16 = arith.constant 0 : index
      %18 = vector.load %arg4[%c0_15, %c0_16] : memref<128x10xf32, #tpu.memory_space<vmem>>, vector<128x10xf32>
      %cst_17 = arith.constant dense<0.000000e+00> : vector<1x10xf32>
      %19 = tpu.matmul %17, %18, %cst_17 {dimension_numbers = #tpu.dot_dimension_numbers<[1], [0], [0], [1], [0, 0, 1, 1], [], []>} : vector<1x128xf32>, vector<128x10xf32>, vector<1x10xf32> -> vector<1x10xf32>
      %c0_18 = arith.constant 0 : index
      %c0_19 = arith.constant 0 : index
      %20 = vector.load %arg5[%c0_18, %c0_19] : memref<1x10xf32, #tpu.memory_space<vmem>>, vector<1x10xf32>
      %21 = arith.addf %19, %20 : vector<1x10xf32>
      %c0_20 = arith.constant 0 : index
      %c0_21 = arith.constant 0 : index
      %22 = vector.load %arg6[%c0_20, %c0_21] : memref<1x8xf32, #tpu.memory_space<vmem>>, vector<1x8xf32>
      %23 = math.absf %22 : vector<1x8xf32>
      %cst_22 = arith.constant 0x7F800000 : f32
      %24 = vector.broadcast %cst_22 : f32 to vector<1x8xf32>
      %25 = arith.cmpf oeq, %23, %24 : vector<1x8xf32>
      %cst_23 = arith.constant 1.000000e+05 : f32
      %26 = vector.broadcast %cst_23 : f32 to vector<1x8xf32>
      %27 = arith.select %25, %26, %22 : vector<1x8xi1>, vector<1x8xf32>
      %c0_24 = arith.constant 0 : index
      %c0_25 = arith.constant 0 : index
      %28 = vector.load %arg8[%c0_24, %c0_25] : memref<10x32xf32, #tpu.memory_space<vmem>>, vector<10x32xf32>
      %cst_26 = arith.constant dense<0.000000e+00> : vector<1x32xf32>
      %29 = tpu.matmul %21, %28, %cst_26 {dimension_numbers = #tpu.dot_dimension_numbers<[1], [0], [0], [1], [0, 0, 1, 1], [], []>} : vector<1x10xf32>, vector<10x32xf32>, vector<1x32xf32> -> vector<1x32xf32>
      %c0_27 = arith.constant 0 : index
      %c0_28 = arith.constant 0 : index
      %30 = vector.load %arg9[%c0_27, %c0_28] : memref<8x32xf32, #tpu.memory_space<vmem>>, vector<8x32xf32>
      %cst_29 = arith.constant dense<0.000000e+00> : vector<1x32xf32>
      %31 = tpu.matmul %27, %30, %cst_29 {dimension_numbers = #tpu.dot_dimension_numbers<[1], [0], [0], [1], [0, 0, 1, 1], [], []>} : vector<1x8xf32>, vector<8x32xf32>, vector<1x32xf32> -> vector<1x32xf32>
      %32 = arith.addf %29, %31 : vector<1x32xf32>
      %c0_30 = arith.constant 0 : index
      %c0_31 = arith.constant 0 : index
      %33 = vector.load %arg7[%c0_30, %c0_31] : memref<1x4xf32, #tpu.memory_space<vmem>>, vector<1x4xf32>
      %c0_32 = arith.constant 0 : index
      %c0_33 = arith.constant 0 : index
      %34 = vector.load %arg10[%c0_32, %c0_33] : memref<4x32xf32, #tpu.memory_space<vmem>>, vector<4x32xf32>
      %cst_34 = arith.constant dense<0.000000e+00> : vector<1x32xf32>
      %35 = tpu.matmul %33, %34, %cst_34 {dimension_numbers = #tpu.dot_dimension_numbers<[1], [0], [0], [1], [0, 0, 1, 1], [], []>} : vector<1x4xf32>, vector<4x32xf32>, vector<1x32xf32> -> vector<1x32xf32>
      %36 = arith.addf %32, %35 : vector<1x32xf32>
      %c0_35 = arith.constant 0 : index
      %c0_36 = arith.constant 0 : index
      %37 = vector.load %arg11[%c0_35, %c0_36] : memref<1x32xf32, #tpu.memory_space<vmem>>, vector<1x32xf32>
      %38 = arith.addf %36, %37 : vector<1x32xf32>
      %cst_37 = arith.constant 0.000000e+00 : f32
      %39 = vector.broadcast %cst_37 : f32 to vector<1x32xf32>
      %40 = arith.maximumf %38, %39 : vector<1x32xf32>
      %c0_38 = arith.constant 0 : index
      %c0_39 = arith.constant 0 : index
      %41 = vector.load %arg12[%c0_38, %c0_39] : memref<32x32xf32, #tpu.memory_space<vmem>>, vector<32x32xf32>
      %cst_40 = arith.constant dense<0.000000e+00> : vector<1x32xf32>
      %42 = tpu.matmul %40, %41, %cst_40 {dimension_numbers = #tpu.dot_dimension_numbers<[1], [0], [0], [1], [0, 0, 1, 1], [], []>} : vector<1x32xf32>, vector<32x32xf32>, vector<1x32xf32> -> vector<1x32xf32>
      %c0_41 = arith.constant 0 : index
      %c0_42 = arith.constant 0 : index
      %43 = vector.load %arg13[%c0_41, %c0_42] : memref<1x32xf32, #tpu.memory_space<vmem>>, vector<1x32xf32>
      %44 = arith.addf %42, %43 : vector<1x32xf32>
      %cst_43 = arith.constant 0.000000e+00 : f32
      %45 = vector.broadcast %cst_43 : f32 to vector<1x32xf32>
      %46 = arith.maximumf %44, %45 : vector<1x32xf32>
      %c0_44 = arith.constant 0 : index
      %c0_45 = arith.constant 0 : index
      %47 = vector.load %arg14[%c0_44, %c0_45] : memref<32x1xf32, #tpu.memory_space<vmem>>, vector<32x1xf32>
      %cst_46 = arith.constant dense<0.000000e+00> : vector<1x1xf32>
      %48 = tpu.matmul %46, %47, %cst_46 {dimension_numbers = #tpu.dot_dimension_numbers<[1], [0], [0], [1], [0, 0, 1, 1], [], []>} : vector<1x32xf32>, vector<32x1xf32>, vector<1x1xf32> -> vector<1x1xf32>
      %c0_47 = arith.constant 0 : index
      %c0_48 = arith.constant 0 : index
      %49 = vector.load %arg15[%c0_47, %c0_48] : memref<1x1xf32, #tpu.memory_space<vmem>>, vector<1x1xf32>
      %50 = arith.addf %48, %49 : vector<1x1xf32>
      %c0_49 = arith.constant 0 : index
      %c0_50 = arith.constant 0 : index
      %51 = vector.load %arg16[%c0_49, %c0_50] : memref<1x1xf32, #tpu.memory_space<vmem>>, vector<1x1xf32>
      tpu.vector_store %arg16[%c0_49, %c0_50], %50 {strides = array<i32>} : memref<1x1xf32, #tpu.memory_space<vmem>>, vector<1x1xf32>,
    } else {
    }
    return
  }
  func.func @transform_0(%arg0: i32) -> (i32, i32) {
    %c0_i32 = arith.constant 0 : i32
    %c0_i32_0 = arith.constant 0 : i32
    return %c0_i32, %arg0 : i32, i32
  }
  func.func @transform_1(%arg0: i32) -> (i32, i32) {
    %c0_i32 = arith.constant 0 : i32
    %c0_i32_0 = arith.constant 0 : i32
    return %arg0, %c0_i32 : i32, i32
  }
  func.func @transform_2(%arg0: i32) -> (i32, i32) {
    %c0_i32 = arith.constant 0 : i32
    %c0_i32_0 = arith.constant 0 : i32
    %c0_i32_1 = arith.constant 0 : i32
    return %c0_i32, %c0_i32_0 : i32, i32
  }
  func.func @transform_3(%arg0: i32) -> (i32, i32) {
    %c0_i32 = arith.constant 0 : i32
    %c0_i32_0 = arith.constant 0 : i32
    %c0_i32_1 = arith.constant 0 : i32
    return %c0_i32, %c0_i32_0 : i32, i32
  }
  func.func @transform_4(%arg0: i32) -> (i32, i32) {
    %c0_i32 = arith.constant 0 : i32
    %c0_i32_0 = arith.constant 0 : i32
    %c0_i32_1 = arith.constant 0 : i32
    return %c0_i32, %c0_i32_0 : i32, i32
  }
  func.func @transform_5(%arg0: i32) -> (i32, i32) {
    %c0_i32 = arith.constant 0 : i32
    %c0_i32_0 = arith.constant 0 : i32
    %c0_i32_1 = arith.constant 0 : i32
    return %c0_i32, %c0_i32_0 : i32, i32
  }
  func.func @transform_6(%arg0: i32) -> (i32, i32) {
    %c0_i32 = arith.constant 0 : i32
    %c0_i32_0 = arith.constant 0 : i32
    %c0_i32_1 = arith.constant 0 : i32
    return %c0_i32, %c0_i32_0 : i32, i32
  }
  func.func @transform_7(%arg0: i32) -> (i32, i32) {
    %c0_i32 = arith.constant 0 : i32
    %c0_i32_0 = arith.constant 0 : i32
    %c0_i32_1 = arith.constant 0 : i32
    return %c0_i32, %c0_i32_0 : i32, i32
  }
  func.func @transform_8(%arg0: i32) -> (i32, i32) {
    %c0_i32 = arith.constant 0 : i32
    %c0_i32_0 = arith.constant 0 : i32
    %c0_i32_1 = arith.constant 0 : i32
    return %c0_i32, %c0_i32_0 : i32, i32
  }
  func.func @transform_9(%arg0: i32) -> (i32, i32) {
    %c0_i32 = arith.constant 0 : i32
    %c0_i32_0 = arith.constant 0 : i32
    %c0_i32_1 = arith.constant 0 : i32
    return %c0_i32, %c0_i32_0 : i32, i32
  }
  func.func @transform_10(%arg0: i32) -> (i32, i32) {
    %c0_i32 = arith.constant 0 : i32
    %c0_i32_0 = arith.constant 0 : i32
    %c0_i32_1 = arith.constant 0 : i32
    return %c0_i32, %c0_i32_0 : i32, i32
  }
  func.func @transform_11(%arg0: i32) -> (i32, i32) {
    %c0_i32 = arith.constant 0 : i32
    %c0_i32_0 = arith.constant 0 : i32
    %c0_i32_1 = arith.constant 0 : i32
    return %c0_i32, %c0_i32_0 : i32, i32
  }
  func.func @transform_12(%arg0: i32) -> (i32, i32) {
    %c0_i32 = arith.constant 0 : i32
    %c0_i32_0 = arith.constant 0 : i32
    %c0_i32_1 = arith.constant 0 : i32
    return %c0_i32, %c0_i32_0 : i32, i32
  }
  func.func @transform_13(%arg0: i32) -> (i32, i32) {
    %c0_i32 = arith.constant 0 : i32
    %c0_i32_0 = arith.constant 0 : i32
    %c0_i32_1 = arith.constant 0 : i32
    return %c0_i32, %c0_i32_0 : i32, i32
  }
  func.func @transform_14(%arg0: i32) -> (i32, i32) {
    %c0_i32 = arith.constant 0 : i32
    %c0_i32_0 = arith.constant 0 : i32
    %c0_i32_1 = arith.constant 0 : i32
    return %c0_i32, %c0_i32_0 : i32, i32
  }
  func.func @transform_15(%arg0: i32) -> (i32, i32) {
    %c0_i32 = arith.constant 0 : i32
    %c0_i32_0 = arith.constant 0 : i32
    %c0_i32_1 = arith.constant 0 : i32
    return %c0_i32, %c0_i32_0 : i32, i32
  }
}

</mosaic_0001>

<bundles_post_ra>
// kernel: critic_forward.3
= control target key start
LH: loop header
LB: loop body
LE: loop exit
PB: predicated region body
PF: predicated region fallthrough
CT: control target
= control target key end

     0   :  { %vm160_vm0 = vcmask 1040384   ;;  %v1001_v2 = vmov 0.0   ;;  %v1002_v7 = vmov 0   ;;  %vm153_vm1 = vcmask 72704   ;;  %s1305_s0 = inlined_call_operand.vmem [shape: f32[9,512], index: 0, kind: input, shape index: {}]   ;;  %s1306_s1 = inlined_call_operand.vmem [shape: f32[9,512], index: 1, kind: input, shape index: {}]   ;;  %s1307_s4 = inlined_call_operand.vmem [shape: f32[16,9], index: 4, kind: input, shape index: {}]   ;;  %s1308_s2 = inlined_call_operand.vmem [shape: f32[9,512], index: 2, kind: input, shape index: {}]   ;;  %s1309_s3 = inlined_call_operand.vmem [shape: f32[9,512], index: 3, kind: input, shape index: {}]   ;;  %s1310_s5 = inlined_call_operand.vmem [shape: f32[16,1], index: 5, kind: input, shape index: {}]   ;;  %s1311_s6 = inlined_call_operand.vmem [shape: bf16[16,512], index: 6, kind: output, shape index: {}]  }
   0x1   :  { %v26_v0 = vld [vmem:[%s1305_s0 + $0x8] sm:$0xff]  ;;  %273 = vmatprep.mubr.f32.mxu0 %v1001_v2  ;;  %350 = vmatprep.mubr.f32.mxu1 %v1001_v2  ;;  %v28_v5 = vld [vmem:[%s1305_s0 + $0x18] sm:$0xff]  ;;  %v25_v6 = vld [vmem:[%s1305_s0] sm:$0xff]  ;;  %vm1003_vm4 = vmmov 1  }
   0x2   :  { %v30_v1 = vld [vmem:[%s1305_s0 + $0x28] sm:$0x1]  ;;  %v34_v3 = vand.u32 2147483647, %v26_v0  ;;  %1000 = vset.pattern.permute.xlu0 %v1002_v7  ;;  %v32_v8 = vld [vmem:[%s1305_s0 + $0x38] sm:$0x1]  ;;  %vm1060_vm5 = vmpackc.low %vm160_vm0, %vm1003_vm4 }
   0x3   :  { %v38_v4 = vand.u32 2147483647, %v30_v1  ;;  %v36_v9 = vand.u32 2147483647, %v28_v5  ;;  %v29_v10 = vld [vmem:[%s1305_s0 + $0x20] sm:$0x1] }
   0x4   :  { %vm42_vm2 = vcmp.eq.f32.partialorder %v34_v3, inf  ;;  %v40_v11 = vand.u32 2147483647, %v32_v8  ;;  %v33_v12 = vand.u32 2147483647, %v25_v6  ;;  %v27_v17 = vld [vmem:[%s1305_s0 + $0x10] sm:$0xff] }
   0x5   :  { %vm46_vm3 = vcmp.eq.f32.partialorder %v38_v4, inf  ;;  %v50_v13 = vsel %vm42_vm2, 100000.0, %v26_v0  ;;  %vm44_vm6 = vcmp.eq.f32.partialorder %v36_v9, inf  ;;  %v37_v16 = vand.u32 2147483647, %v29_v10  ;;  %v58_v24 = vld [vmem:[%s1306_s1 + $0x8] sm:$0xff] }
   0x6   :  { %v54_v14 = vsel %vm46_vm3, 100000.0, %v30_v1  ;;  %vm48_vm7 = vcmp.eq.f32.partialorder %v40_v11, inf  ;;  %v52_v19 = vsel %vm44_vm6, 100000.0, %v28_v5  ;;  %vm41_vm8 = vcmp.eq.f32.partialorder %v33_v12, inf  ;;  %v31_v20 = vld [vmem:[%s1305_s0 + $0x30] sm:$0x1] }
   0x7   :  { %v949_v18 = vpack.c.bf16 %v54_v14, %v50_v13  ;;  %v56_v21 = vsel %vm48_vm7, 100000.0, %v32_v8  ;;  %vm45_vm9 = vcmp.eq.f32.partialorder %v37_v16, inf  ;;  %v49_v22 = vsel %vm41_vm8, 100000.0, %v25_v6  ;;  %v62_v28 = vld [vmem:[%s1306_s1 + $0x28] sm:$0x1]  ;;  %v60_v29 = vld [vmem:[%s1306_s1 + $0x18] sm:$0xff] }
   0x8   :  { %v35_v23 = vand.u32 2147483647, %v27_v17  ;;  %v955_v25 = vpack.c.bf16 %v56_v21, %v52_v19  ;;  %v53_v26 = vsel %vm45_vm9, 100000.0, %v29_v10  ;;  %v39_v27 = vand.u32 2147483647, %v31_v20  ;;  %v1088_v32 = vld [vmem:[%s1307_s4] sm:$0xff] }
   0x9   :  { %951 = vmatprep.subr.msk.bf16.mxu0 %vm1060_vm5, %v949_v18  ;;  %v952_v30 = vpack.c.bf16 %v53_v26, %v49_v22  ;;  %v66_v33 = vand.u32 2147483647, %v58_v24  ;;  %v70_v34 = vand.u32 2147483647, %v62_v28  ;;  %v57_v35 = vld [vmem:[%s1306_s1] sm:$0xff]  ;;  %v59_v41 = vld [vmem:[%s1306_s1 + $0x10] sm:$0xff] }
   0xa   :  { %vm1081_vm10 = vcmp.eq.f32.partialorder %v35_v23, inf  ;;  %957 = vmatprep.subr.msk.bf16.mxu1 %vm1060_vm5, %v955_v25  ;;  %vm47_vm11 = vcmp.eq.f32.partialorder %v39_v27, inf  ;;  %v64_v37 = vld [vmem:[%s1306_s1 + $0x38] sm:$0x1]  ;;  %v68_v38 = vand.u32 2147483647, %v60_v29 }
   0xb   :  { %v51_v36 = vsel %vm1081_vm10, 100000.0, %v27_v17  ;;  %954 = vmatpush1.bf16.msk.msra.mxu0 %vm1060_vm5, %v952_v30  ;;  %v55_v39 = vsel %vm47_vm11, 100000.0, %v31_v20  ;;  %vm74_vm12 = vcmp.eq.f32.partialorder %v66_v33, inf  ;;  %vm78_vm13 = vcmp.eq.f32.partialorder %v70_v34, inf  ;;  %v61_v45 = vld [vmem:[%s1306_s1 + $0x20] sm:$0x1] }
   0xc   :  { %v72_v40 = vand.u32 2147483647, %v64_v37  ;;  %v958_v42 = vpack.c.bf16 %v55_v39, %v51_v36  ;;  %v82_v43 = vsel %vm74_vm12, 100000.0, %v58_v24  ;;  %v86_v44 = vsel %vm78_vm13, 100000.0, %v62_v28  ;;  %v63_v49 = vld [vmem:[%s1306_s1 + $0x30] sm:$0x1] }
   0xd   :  { %vm76_vm14 = vcmp.eq.f32.partialorder %v68_v38, inf  ;;  %v961_v46 = vpack.c.bf16 %v86_v44, %v82_v43  ;;  %v65_v48 = vand.u32 2147483647, %v57_v35  ;;  %v1114_v50 = vld [vmem:[%s1307_s4 + $0x8] sm:$0xff]  ;;  %v69_v52 = vand.u32 2147483647, %v61_v45 }
   0xe   :  { %vm80_vm15 = vcmp.eq.f32.partialorder %v72_v40, inf  ;;  %v84_v47 = vsel %vm76_vm14, 100000.0, %v60_v29  ;;  %960 = vmatpush1.bf16.msk.msra.mxu1 %vm1060_vm5, %v958_v42  ;;  %911 = vmatmul.mubr.msk.f32.vlgmr.msra.gmra.mrb[0].mxu0 %vm153_vm1, %v1088_v32  ;;  %v67_v53 = vand.u32 2147483647, %v59_v41  ;;  %v90_v54 = vld [vmem:[%s1308_s2 + $0x8] sm:$0xff]  ;;  %v92_v59 = vld [vmem:[%s1308_s2 + $0x18] sm:$0xff] }
   0xf   :  { %v88_v51 = vsel %vm80_vm15, 100000.0, %v64_v37  ;;  %963 = vmatprep.subr.msk.bf16.mxu0 %vm1060_vm5, %v961_v46  ;;  %vm1125_vm0 = vcmp.eq.f32.partialorder %v65_v48, inf  ;;  %v71_v57 = vand.u32 2147483647, %v63_v49  ;;  %279 = vmatprep.mubr.f32.mxu0 %v1001_v2  ;;  %v94_v58 = vld [vmem:[%s1308_s2 + $0x28] sm:$0x1] }
  0x10   :  { %v967_v55 = vpack.c.bf16 %v88_v51, %v84_v47  ;;  %vm77_vm2 = vcmp.eq.f32.partialorder %v69_v52, inf  ;;  %v81_v60 = vsel %vm1125_vm0, 100000.0, %v57_v35  ;;  %vm1138_vm3 = vcmp.eq.f32.partialorder %v67_v53, inf  ;;  %v89_v63 = vld [vmem:[%s1308_s2] sm:$0xff]  ;;  %v91_v4 = vld [vmem:[%s1308_s2 + $0x10] sm:$0xff]  ;;  %v122_v25 = vld [vmem:[%s1309_s3 + $0x8] sm:$0xff] }
  0x11   :  { %v98_v62 = vand.u32 2147483647, %v90_v54  ;;  %915 = vmatmul.mubr.msk.f32.vlgmr.msra.gmra.mrb[0].mxu1 %vm153_vm1, %v1088_v32  ;;  %v85_v0 = vsel %vm77_vm2, 100000.0, %v61_v45  ;;  %vm79_vm4 = vcmp.eq.f32.partialorder %v71_v57, inf  ;;  %v83_v1 = vsel %vm1138_vm3, 100000.0, %v59_v41  ;;  %v124_v31 = vld [vmem:[%s1309_s3 + $0x18] sm:$0xff] }
  0x12   :  { %969 = vmatprep.subr.msk.bf16.mxu1 %vm1060_vm5, %v967_v55  ;;  %v102_v3 = vand.u32 2147483647, %v94_v58  ;;  %v964_v5 = vpack.c.bf16 %v85_v0, %v81_v60  ;;  %v87_v6 = vsel %vm79_vm4, 100000.0, %v63_v49  ;;  %356 = vmatprep.mubr.f32.mxu1 %v1001_v2  ;;  %v96_v8 = vld [vmem:[%s1308_s2 + $0x38] sm:$0x1]  ;;  %v121_v40 = vld [vmem:[%s1309_s3] sm:$0xff] }
  0x13   :  { %912 = vmatmul.mubr.msk.f32.gmra.mrb[2].mxu0 %vm153_vm1, %v1114_v50  ;;  %vm1157_vm6 = vcmp.eq.f32.partialorder %v98_v62, inf  ;;  %v100_v9 = vand.u32 2147483647, %v92_v59  ;;  %v970_v10 = vpack.c.bf16 %v87_v6, %v83_v1  ;;  %v104_v12 = vand.u32 2147483647, %v96_v8  ;;  %v123_v45 = vld [vmem:[%s1309_s3 + $0x10] sm:$0xff] }
  0x14   :  { %427 = vmatprep.mubr.f32.mxu0 %v1001_v2  ;;  %vm110_vm7 = vcmp.eq.f32.partialorder %v102_v3, inf  ;;  %v114_v11 = vsel %vm1157_vm6, 100000.0, %v90_v54  ;;  %v93_v13 = vld [vmem:[%s1308_s2 + $0x20] sm:$0x1]  ;;  %966 = vmatpush1.bf16.msk.msra.mxu0 %vm1060_vm5, %v964_v5  ;;  %v97_v17 = vand.u32 2147483647, %v89_v63 }
  0x15   :  { %v118_v14 = vsel %vm110_vm7, 100000.0, %v94_v58  ;;  %vm1172_vm8 = vcmp.eq.f32.partialorder %v100_v9, inf  ;;  %v101_v18 = vand.u32 2147483647, %v93_v13  ;;  %972 = vmatpush1.bf16.msk.msra.mxu1 %vm1060_vm5, %v970_v10  ;;  %vm112_vm9 = vcmp.eq.f32.partialorder %v104_v12, inf  ;;  %v849_v49 = vld [vmem:[%s1310_s5] sm:$0xff] }
  0x16   :  { %v973_v19 = vpack.c.bf16 %v118_v14, %v114_v11  ;;  %v116_v20 = vsel %vm1172_vm8, 100000.0, %v92_v59  ;;  %v95_v21 = vld [vmem:[%s1308_s2 + $0x30] sm:$0x1]  ;;  %v99_v22 = vand.u32 2147483647, %v91_v4  ;;  %916 = vmatmul.mubr.msk.f32.gmra.mrb[2].mxu1 %vm153_vm1, %v1114_v50  ;;  %v120_v23 = vsel %vm112_vm9, 100000.0, %v96_v8  ;;  %853 = vperm.xlu0 %1000, %v849_v49  }
  0x17   :  { %vm105_vm10 = vcmp.eq.f32.partialorder %v97_v17, inf  ;;  %vm109_vm11 = vcmp.eq.f32.partialorder %v101_v18, inf  ;;  %v103_v24 = vand.u32 2147483647, %v95_v21  ;;  %504 = vmatprep.mubr.f32.mxu1 %v1001_v2  ;;  %919 = vmatmul.mubr.msk.f32.vlgmr.msra.gmra.mrb[4].mxu0 %vm153_vm1, %v1088_v32  ;;  %v979_v26 = vpack.c.bf16 %v120_v23, %v116_v20  ;;  %v126_v30 = vld [vmem:[%s1309_s3 + $0x28] sm:$0x1] }
  0x18   :  { %v113_v27 = vsel %vm105_vm10, 100000.0, %v89_v63  ;;  %v117_v28 = vsel %vm109_vm11, 100000.0, %v93_v13  ;;  %vm1191_vm12 = vcmp.eq.f32.partialorder %v99_v22, inf  ;;  %975 = vmatprep.subr.msk.bf16.mxu0 %vm1060_vm5, %v973_v19  ;;  %433 = vmatprep.mubr.f32.mxu0 %v1001_v2  ;;  %v130_v35 = vand.u32 2147483647, %v122_v25  ;;  %v850_v62 = vld [vmem:[%s1310_s5 + $0x8] sm:$0xff] }
  0x19   :  { %v976_v33 = vpack.c.bf16 %v117_v28, %v113_v27  ;;  %vm111_vm13 = vcmp.eq.f32.partialorder %v103_v24, inf  ;;  %v115_v34 = vsel %vm1191_vm12, 100000.0, %v91_v4  ;;  %v128_v36 = vld [vmem:[%s1309_s3 + $0x38] sm:$0x1]  ;;  %981 = vmatprep.subr.msk.bf16.mxu1 %vm1060_vm5, %v979_v26  ;;  %v134_v38 = vand.u32 2147483647, %v126_v30 }
  0x1a   :  { %v119_v37 = vsel %vm111_vm13, 100000.0, %v95_v21  ;;  %v132_v39 = vand.u32 2147483647, %v124_v31  ;;  %923 = vmatmul.mubr.msk.f32.vlgmr.msra.gmra.mrb[4].mxu1 %vm153_vm1, %v1088_v32  ;;  %vm1218_vm14 = vcmp.eq.f32.partialorder %v130_v35, inf  ;;  %v136_v43 = vand.u32 2147483647, %v128_v36  ;;  %858 = vperm.xlu0 %1000, %v850_v62  }
  0x1b   :  { %978 = vmatpush1.bf16.msk.msra.mxu0 %vm1060_vm5, %v976_v33  ;;  %v982_v41 = vpack.c.bf16 %v119_v37, %v115_v34  ;;  %v125_v44 = vld [vmem:[%s1309_s3 + $0x20] sm:$0x1]  ;;  %510 = vmatprep.mubr.f32.mxu1 %v1001_v2  ;;  %vm142_vm15 = vcmp.eq.f32.partialorder %v134_v38, inf  ;;  %v146_v46 = vsel %vm1218_vm14, 100000.0, %v122_v25  ;;  %v129_v48 = vand.u32 2147483647, %v121_v40 }
  0x1c   :  { %920 = vmatmul.mubr.msk.f32.gmra.mrb[6].mxu0 %vm153_vm1, %v1114_v50  ;;  %vm1233_vm0 = vcmp.eq.f32.partialorder %v132_v39, inf  ;;  %v150_v51 = vsel %vm142_vm15, 100000.0, %v126_v30  ;;  %vm144_vm2 = vcmp.eq.f32.partialorder %v136_v43, inf  ;;  %v133_v53 = vand.u32 2147483647, %v125_v44 }
  0x1d   :  { %984 = vmatpush1.bf16.msk.msra.mxu1 %vm1060_vm5, %v982_v41  ;;  %581 = vmatprep.mubr.f32.mxu0 %v1001_v2  ;;  %v148_v52 = vsel %vm1233_vm0, 100000.0, %v124_v31  ;;  %v985_v54 = vpack.c.bf16 %v150_v51, %v146_v46  ;;  %v152_v55 = vsel %vm144_vm2, 100000.0, %v128_v36  ;;  %vm1245_vm3 = vcmp.eq.f32.partialorder %v129_v48, inf  ;;  %v127_v57 = vld [vmem:[%s1309_s3 + $0x30] sm:$0x1] }
  0x1e   :  { %v131_v58 = vand.u32 2147483647, %v123_v45  ;;  %924 = vmatmul.mubr.msk.f32.gmra.mrb[6].mxu1 %vm153_vm1, %v1114_v50  ;;  %v991_v59 = vpack.c.bf16 %v152_v55, %v148_v52  ;;  %vm141_vm4 = vcmp.eq.f32.partialorder %v133_v53, inf  ;;  %v145_v60 = vsel %vm1245_vm3, 100000.0, %v121_v40 }
  0x1f   :  { %v135_v61 = vand.u32 2147483647, %v127_v57  ;;  %658 = vmatprep.mubr.f32.mxu1 %v1001_v2  ;;  %v149_v63 = vsel %vm141_vm4, 100000.0, %v125_v44  ;;  %987 = vmatprep.subr.msk.bf16.mxu0 %vm1060_vm5, %v985_v54 }
  0x20   :  { %927 = vmatmul.mubr.msk.f32.vlgmr.msra.gmra.mrb[8].mxu0 %vm153_vm1, %v1088_v32  ;;  %vm139_vm6 = vcmp.eq.f32.partialorder %v131_v58, inf  ;;  %993 = vmatprep.subr.msk.bf16.mxu1 %vm1060_vm5, %v991_v59  ;;  %v988_v0 = vpack.c.bf16 %v149_v63, %v145_v60 }
  0x21   :  { %vm143_vm7 = vcmp.eq.f32.partialorder %v135_v61, inf  ;;  %v147_v1 = vsel %vm139_vm6, 100000.0, %v123_v45  ;;  %587 = vmatprep.mubr.f32.mxu0 %v1001_v2 }
  0x22   :  { %v151_v3 = vsel %vm143_vm7, 100000.0, %v127_v57  ;;  %931 = vmatmul.mubr.msk.f32.vlgmr.msra.gmra.mrb[8].mxu1 %vm153_vm1, %v1088_v32  ;;  %990 = vmatpush1.bf16.msk.msra.mxu0 %vm1060_vm5, %v988_v0 }
  0x23   :  { %v994_v4 = vpack.c.bf16 %v151_v3, %v147_v1  ;;  %664 = vmatprep.mubr.f32.mxu1 %v1001_v2 }
  0x24   :  { %928 = vmatmul.mubr.msk.f32.gmra.mrb[10].mxu0 %vm153_vm1, %v1114_v50 }
  0x25   :  { %996 = vmatpush1.bf16.msk.msra.mxu1 %vm1060_vm5, %v994_v4  ;;  %735 = vmatprep.mubr.f32.mxu0 %v1001_v2 }
  0x26   :  { %932 = vmatmul.mubr.msk.f32.gmra.mrb[10].mxu1 %vm153_vm1, %v1114_v50 }
  0x27   :  { %812 = vmatprep.mubr.f32.mxu1 %v1001_v2 }
  0x28   :  { %935 = vmatmul.mubr.msk.f32.vlgmr.msra.gmra.mrb[12].mxu0 %vm153_vm1, %v1088_v32 }
  0x29   :  { %741 = vmatprep.mubr.f32.mxu0 %v1001_v2 }
  0x2a   :  { %939 = vmatmul.mubr.msk.f32.vlgmr.msra.gmra.mrb[12].mxu1 %vm153_vm1, %v1088_v32 }
  0x2b   :  { %818 = vmatprep.mubr.f32.mxu1 %v1001_v2 }
  0x2c   :  { %936 = vmatmul.mubr.msk.f32.gmra.mrb[14].mxu0 %vm153_vm1, %v1114_v50 }
  0x2e   :  { %940 = vmatmul.mubr.msk.f32.gmra.mrb[14].mxu1 %vm153_vm1, %v1114_v50 }
  0x95   :  { %v854_v39 = vpop.permute.xlu0 %853 }
  0x99   :  { %v859_v63 = vpop.permute.xlu0 %858 }
  0xe1   :  { %v275_v15 = vpop.f32.mrb[0].mxu0 }
  0xe2   :  { %v277_v5 = vpop.f32.mrb[1].mxu0 }
  0xe4   :  { %v352_v6 = vpop.f32.mrb[0].mxu1 }
  0xe5   :  { %v354_v7 = vpop.f32.mrb[1].mxu1 }
  0xe6   :  { %v281_v8 = vpop.f32.mrb[2].mxu0 }
  0xe7   :  { %v283_v9 = vpop.f32.mrb[3].mxu0 }
  0xe9   :  { %v358_v10 = vpop.f32.mrb[2].mxu1 }
  0xea   :  { %v1290_v11 = vpop.f32.mrb[3].mxu1  ;;  %v429_v12 = vpop.f32.mrb[4].mxu0 }
  0xeb   :  { %v825_v13 = vmax.f32 %v275_v15, %v429_v12  ;;  %v431_v32 = vpop.f32.mrb[5].mxu0 }
  0xec   :  { %v826_v14 = vmax.f32 %v277_v5, %v431_v32 }
  0xed   :  { %v506_v2 = vpop.f32.mrb[4].mxu1 }
  0xee   :  { %v827_v16 = vmax.f32 %v352_v6, %v506_v2  ;;  %v508_v17 = vpop.f32.mrb[5].mxu1 }
  0xef   :  { %v435_v18 = vpop.f32.mrb[6].mxu0  ;;  %v828_v19 = vmax.f32 %v354_v7, %v508_v17 }
  0xf0   :  { %v829_v20 = vmax.f32 %v281_v8, %v435_v18  ;;  %v437_v50 = vpop.f32.mrb[7].mxu0 }
  0xf1   :  { %v830_v21 = vmax.f32 %v283_v9, %v437_v50  ;;  %v512_v22 = vpop.f32.mrb[6].mxu1 }
  0xf2   :  { %v831_v23 = vmax.f32 %v358_v10, %v512_v22  ;;  %v514_v24 = vpop.f32.mrb[7].mxu1 }
  0xf3   :  { %v583_v25 = vpop.f32.mrb[8].mxu0  ;;  %v832_v26 = vmax.f32 %v1290_v11, %v514_v24 }
  0xf4   :  { %v585_v27 = vpop.f32.mrb[9].mxu0 }
  0xf5   :  { %v660_v28 = vpop.f32.mrb[8].mxu1 }
  0xf6   :  { %v662_v29 = vpop.f32.mrb[9].mxu1 }
  0xf7   :  { %v589_v30 = vpop.f32.mrb[10].mxu0 }
  0xf8   :  { %v591_v31 = vpop.f32.mrb[11].mxu0 }
  0xf9   :  { %v666_v33 = vpop.f32.mrb[10].mxu1 }
  0xfa   :  { %v668_v34 = vpop.f32.mrb[11].mxu1 }
  0xfb   :  { %v737_v35 = vpop.f32.mrb[12].mxu0 }
  0xfc   :  { %v833_v36 = vmax.f32 %v583_v25, %v737_v35  ;;  %v739_v37 = vpop.f32.mrb[13].mxu0 }
  0xfd   :  { %v834_v38 = vmax.f32 %v585_v27, %v739_v37  ;;  %v814_v41 = vpop.f32.mrb[12].mxu1 }
  0xfe   :  { %v841_v40 = vmax.f32 %v825_v13, %v833_v36  ;;  %v835_v42 = vmax.f32 %v660_v28, %v814_v41  ;;  %v816_v44 = vpop.f32.mrb[13].mxu1 }
  0xff   :  { %v842_v43 = vmax.f32 %v826_v14, %v834_v38  ;;  %v743_v45 = vpop.f32.mrb[14].mxu0  ;;  %v836_v46 = vmax.f32 %v662_v29, %v816_v44 }
 0x100   :  { %v861_v47 = vadd.f32 %v854_v39, %v841_v40  ;;  %v837_v48 = vmax.f32 %v589_v30, %v743_v45  ;;  %v745_v49 = vpop.f32.mrb[15].mxu0  ;;  %v843_v51 = vmax.f32 %v827_v16, %v835_v42 }
 0x101   :  { %v862_v52 = vadd.f32 %v854_v39, %v842_v43  ;;  %v838_v53 = vmax.f32 %v591_v31, %v745_v49  ;;  %v844_v54 = vmax.f32 %v828_v19, %v836_v46  ;;  %v820_v57 = vpop.f32.mrb[14].mxu1 }
 0x102   :  { %v869_v55 = vmax.f32 %v861_v47, 0.0  ;;  %v845_v56 = vmax.f32 %v829_v20, %v837_v48  ;;  %v863_v58 = vadd.f32 %v854_v39, %v843_v51  ;;  %v839_v60 = vmax.f32 %v666_v33, %v820_v57  ;;  %v822_v62 = vpop.f32.mrb[15].mxu1 }
 0x103   :  { %v870_v59 = vmax.f32 %v862_v52, 0.0  ;;  %v846_v61 = vmax.f32 %v830_v21, %v838_v53  ;;  %v864_v0 = vadd.f32 %v854_v39, %v844_v54  ;;  %v840_v1 = vmax.f32 %v668_v34, %v822_v62 }
 0x104   :  { %v865_v3 = vadd.f32 %v859_v63, %v845_v56  ;;  %v871_v4 = vmax.f32 %v863_v58, 0.0  ;;  %v847_v5 = vmax.f32 %v831_v23, %v839_v60 }
 0x105   :  { %v945_v15 = vpack.c.bf16 %v870_v59, %v869_v55  ;;  %v866_v6 = vadd.f32 %v859_v63, %v846_v61  ;;  %v872_v7 = vmax.f32 %v864_v0, 0.0  ;;  %v848_v8 = vmax.f32 %v832_v26, %v840_v1 }
 0x106   :  { %v873_v9 = vmax.f32 %v865_v3, 0.0  ;;  %v867_v10 = vadd.f32 %v859_v63, %v847_v5 }
 0x107   :  { %901 = vst [vmem:[%s1311_s6] sm:$0xff] %v945_v15  ;;  %v874_v11 = vmax.f32 %v866_v6, 0.0  ;;  %v946_v12 = vpack.c.bf16 %v872_v7, %v871_v4  ;;  %v868_v13 = vadd.f32 %v859_v63, %v848_v8 }
 0x108   :  { %v875_v32 = vmax.f32 %v867_v10, 0.0 }
 0x109   :  { %v947_v14 = vpack.c.bf16 %v874_v11, %v873_v9  ;;  %902 = vst [vmem:[%s1311_s6 + $0x8] sm:$0xff] %v946_v12  ;;  %v876_v2 = vmax.f32 %v868_v13, 0.0 }
 0x10b   :  { %903 = vst [vmem:[%s1311_s6 + $0x10] sm:$0xff] %v947_v14  ;;  %v948_v16 = vpack.c.bf16 %v876_v2, %v875_v32 }
 0x10d   :  { %904 = vst [vmem:[%s1311_s6 + $0x18] sm:$0xff] %v948_v16 }

// kernel: critic_forward.4
= control target key start
LH: loop header
LB: loop body
LE: loop exit
PB: predicated region body
PF: predicated region fallthrough
CT: control target
= control target key end

     0   :  { %v588_v1 = vmov 0   ;;  %vm334_vm0 = vcmask 130048   ;;  %s768_s1 = inlined_call_operand.vmem [shape: bf16[144,128], index: 1, kind: input, shape index: {}]   ;;  %s769_s3 = inlined_call_operand.vmem [shape: bf16[144,128], index: 3, kind: input, shape index: {}]   ;;  %s770_s0 = inlined_call_operand.vmem [shape: bf16[144,128], index: 0, kind: input, shape index: {}]   ;;  %s771_s2 = inlined_call_operand.vmem [shape: bf16[144,128], index: 2, kind: input, shape index: {}]   ;;  %s772_s4 = inlined_call_operand.vmem [shape: bf16[32,144], index: 4, kind: input, shape index: {}]   ;;  %s773_s5 = inlined_call_operand.vmem [shape: f32[32,1], index: 5, kind: input, shape index: {}]   ;;  %s774_s6 = inlined_call_operand.vmem [shape: f32[32,128], index: 6, kind: output, shape index: {}]  }
   0x1   :  { %v546_v0 = vld [vmem:[%s768_s1] sm:$0xff]   ;;  %544 = vset.pattern.permute.xlu0 %v588_v1  ;;  %545 = vset.pattern.permute.xlu1 %v588_v1  ;;  %v550_v5 = vld [vmem:[%s768_s1 + $0x8] sm:$0xff]   ;;  %v554_v9 = vld [vmem:[%s768_s1 + $0x10] sm:$0xff]  }
   0x2   :  { %v547_v2 = vld [vmem:[%s769_s3] sm:$0xff]   ;;  %341 = vmatprep.subr.bf16.mxu0 %v546_v0  ;;  %v551_v6 = vld [vmem:[%s769_s3 + $0x8] sm:$0xff]   ;;  %v555_v10 = vld [vmem:[%s769_s3 + $0x10] sm:$0xff]  }
   0x3   :  { %v548_v3 = vld [vmem:[%s770_s0] sm:$0xff]   ;;  %394 = vmatprep.subr.bf16.mxu1 %v547_v2  ;;  %v552_v7 = vld [vmem:[%s770_s0 + $0x8] sm:$0xff]   ;;  %v556_v11 = vld [vmem:[%s770_s0 + $0x10] sm:$0xff]  }
   0x4   :  { %v549_v4 = vld [vmem:[%s771_s2] sm:$0xff]   ;;  %342 = vmatpush1.bf16.msra.mxu0 %v548_v3  ;;  %v553_v8 = vld [vmem:[%s771_s2 + $0x8] sm:$0xff]   ;;  %v557_v12 = vld [vmem:[%s771_s2 + $0x10] sm:$0xff]  }
   0x5   :  { %395 = vmatpush1.bf16.msra.mxu1 %v549_v4  ;;  %343 = vmatprep.subr.bf16.mxu0 %v550_v5  ;;  %v558_v13 = vld [vmem:[%s768_s1 + $0x18] sm:$0xff]   ;;  %v562_v17 = vld [vmem:[%s768_s1 + $0x20] sm:$0xff]   ;;  %v566_v21 = vld [vmem:[%s768_s1 + $0x28] sm:$0xff]  }
   0x6   :  { %396 = vmatprep.subr.bf16.mxu1 %v551_v6  ;;  %v559_v14 = vld [vmem:[%s769_s3 + $0x18] sm:$0xff]   ;;  %v563_v18 = vld [vmem:[%s769_s3 + $0x20] sm:$0xff]   ;;  %v567_v22 = vld [vmem:[%s769_s3 + $0x28] sm:$0xff]  }
   0x7   :  { %v560_v15 = vld [vmem:[%s770_s0 + $0x18] sm:$0xff]   ;;  %v564_v19 = vld [vmem:[%s770_s0 + $0x20] sm:$0xff]   ;;  %v568_v23 = vld [vmem:[%s770_s0 + $0x28] sm:$0xff]  }
   0x8   :  { %344 = vmatpush1.bf16.msra.mxu0 %v552_v7  ;;  %v561_v16 = vld [vmem:[%s771_s2 + $0x18] sm:$0xff]   ;;  %v565_v20 = vld [vmem:[%s771_s2 + $0x20] sm:$0xff]   ;;  %v569_v24 = vld [vmem:[%s771_s2 + $0x28] sm:$0xff]  }
   0x9   :  { %397 = vmatpush1.bf16.msra.mxu1 %v553_v8  ;;  %345 = vmatprep.subr.bf16.mxu0 %v554_v9  ;;  %v570_v25 = vld [vmem:[%s768_s1 + $0x30] sm:$0xff]   ;;  %v574_v29 = vld [vmem:[%s768_s1 + $0x38] sm:$0xff]   ;;  %v578_v33 = vld [vmem:[%s768_s1 + $0x40] sm:$0xff]  }
   0xa   :  { %398 = vmatprep.subr.bf16.mxu1 %v555_v10  ;;  %v571_v26 = vld [vmem:[%s769_s3 + $0x30] sm:$0xff]   ;;  %v575_v30 = vld [vmem:[%s769_s3 + $0x38] sm:$0xff]   ;;  %v579_v34 = vld [vmem:[%s769_s3 + $0x40] sm:$0xff]  }
   0xb   :  { %v572_v27 = vld [vmem:[%s770_s0 + $0x30] sm:$0xff]   ;;  %v576_v31 = vld [vmem:[%s770_s0 + $0x38] sm:$0xff]   ;;  %v580_v35 = vld [vmem:[%s770_s0 + $0x40] sm:$0xff]  }
   0xc   :  { %346 = vmatpush1.bf16.msra.mxu0 %v556_v11  ;;  %v573_v28 = vld [vmem:[%s771_s2 + $0x30] sm:$0xff]   ;;  %v577_v32 = vld [vmem:[%s771_s2 + $0x38] sm:$0xff]   ;;  %v581_v36 = vld [vmem:[%s771_s2 + $0x40] sm:$0xff]  }
   0xd   :  { %399 = vmatpush1.bf16.msra.mxu1 %v557_v12  ;;  %347 = vmatprep.subr.bf16.mxu0 %v558_v13  ;;  %v582_v37 = vld [vmem:[%s772_s4] ss:$8 sps:$4 sm:$0xff]   ;;  %v584_v38 = vld [vmem:[%s772_s4 + $0x4] ss:$8 sps:$4 sm:$0xff]   ;;  %v585_v39 = vld [vmem:[%s772_s4 + $0x14] ss:$8 sps:$4 sm:$0xff]  }
   0xe   :  { %400 = vmatprep.subr.bf16.mxu1 %v559_v14  ;;  %539 = vmatprep.mubr.msk.bf16.mxu0 %vm334_vm0, %v584_v38  ;;  %v459_v40 = vld [vmem:[%s773_s5] sm:$0xff]  ;;  %v461_v41 = vld [vmem:[%s773_s5 + $0x10] sm:$0xff]  ;;  %v460_v42 = vld [vmem:[%s773_s5 + $0x8] sm:$0xff] }
   0xf   :  { %541 = vmatprep.mubr.msk.bf16.mxu1 %vm334_vm0, %v584_v38  ;;  %465 = vperm.xlu0 %544, %v459_v40   ;;  %v462_v43 = vld [vmem:[%s773_s5 + $0x18] sm:$0xff] }
  0x10   :  { %348 = vmatpush1.bf16.msra.mxu0 %v560_v15  ;;  %475 = vperm.xlu1 %545, %v461_v41   ;;  %v587_v44 = vld [vmem:[%s772_s4 + $0x10] ss:$8 sps:$4 sm:$0xff]  }
  0x11   :  { %401 = vmatpush1.bf16.msra.mxu1 %v561_v16  ;;  %349 = vmatprep.subr.bf16.mxu0 %v562_v17 }
  0x12   :  { %402 = vmatprep.subr.bf16.mxu1 %v563_v18 }
  0x13   :  { %470 = vperm.xlu0 %544, %v460_v42  }
  0x14   :  { %350 = vmatpush1.bf16.msra.mxu0 %v564_v19  ;;  %480 = vperm.xlu1 %545, %v462_v43  }
  0x15   :  { %403 = vmatpush1.bf16.msra.mxu1 %v565_v20  ;;  %351 = vmatprep.subr.bf16.mxu0 %v566_v21 }
  0x16   :  { %404 = vmatprep.subr.bf16.mxu1 %v567_v22 }
  0x18   :  { %352 = vmatpush1.bf16.msra.mxu0 %v568_v23 }
  0x19   :  { %405 = vmatpush1.bf16.msra.mxu1 %v569_v24  ;;  %353 = vmatprep.subr.bf16.mxu0 %v570_v25 }
  0x1a   :  { %406 = vmatprep.subr.bf16.mxu1 %v571_v26 }
  0x1c   :  { %354 = vmatpush1.bf16.msra.mxu0 %v572_v27 }
  0x1d   :  { %407 = vmatpush1.bf16.msra.mxu1 %v573_v28  ;;  %355 = vmatprep.subr.bf16.mxu0 %v574_v29 }
  0x1e   :  { %408 = vmatprep.subr.bf16.mxu1 %v575_v30 }
  0x20   :  { %356 = vmatpush1.bf16.msra.mxu0 %v576_v31 }
  0x21   :  { %409 = vmatpush1.bf16.msra.mxu1 %v577_v32  ;;  %357 = vmatprep.subr.bf16.mxu0 %v578_v33 }
  0x22   :  { %410 = vmatprep.subr.bf16.mxu1 %v579_v34 }
  0x24   :  { %358 = vmatpush1.bf16.msra.mxu0 %v580_v35 }
  0x25   :  { %411 = vmatpush1.bf16.msra.mxu1 %v581_v36 }
  0x27   :  { %374 = vmatmul.mubr.bf16.vlgmr.msra.gmra.mrb[0].mxu0 %v582_v37 }
  0x28   :  { %427 = vmatmul.mubr.bf16.vlgmr.msra.gmra.mrb[0].mxu1 %v582_v37  ;;  %540 = vmatprep.mubr.msk.bf16.mxu0 %vm334_vm0, %v585_v39 }
  0x29   :  { %542 = vmatprep.mubr.msk.bf16.mxu1 %vm334_vm0, %v585_v39 }
  0x2f   :  { %384 = vmatmul.mubr.bf16.gmra.mrb[4].mxu0 %v587_v44 }
  0x30   :  { %437 = vmatmul.mubr.bf16.gmra.mrb[4].mxu1 %v587_v44 }
  0x8e   :  { %v466_v45 = vpop.permute.xlu0 %465 }
  0x8f   :  { %v476_v62 = vpop.permute.xlu1 %475 }
  0x92   :  { %v471_v59 = vpop.permute.xlu0 %470 }
  0x93   :  { %v481_v17 = vpop.permute.xlu1 %480 }
  0xfa   :  { %v375_v46 = vpop.f32.mrb[0].mxu0 }
  0xfb   :  { %v428_v47 = vpop.f32.mrb[0].mxu1  ;;  %v377_v48 = vpop.f32.mrb[1].mxu0 }
  0xfc   :  { %v430_v49 = vpop.f32.mrb[1].mxu1  ;;  %v447_v50 = vmax.f32 %v375_v46, %v377_v48  ;;  %v379_v52 = vpop.f32.mrb[2].mxu0 }
  0xfd   :  { %v451_v51 = vmax.f32 %v428_v47, %v430_v49  ;;  %v432_v53 = vpop.f32.mrb[2].mxu1  ;;  %v381_v54 = vpop.f32.mrb[3].mxu0 }
  0xfe   :  { %v434_v55 = vpop.f32.mrb[3].mxu1  ;;  %v448_v57 = vmax.f32 %v379_v52, %v381_v54 }
  0xff   :  { %v455_v56 = vmax.f32 %v447_v50, %v451_v51  ;;  %v452_v58 = vmax.f32 %v432_v53, %v434_v55 }
 0x101   :  { %v483_v60 = vadd.f32 %v466_v45, %v455_v56  ;;  %v456_v61 = vmax.f32 %v448_v57, %v452_v58 }
 0x102   :  { %v385_v1 = vpop.f32.mrb[4].mxu0 }
 0x103   :  { %v487_v63 = vmax.f32 %v483_v60, 0.0  ;;  %v484_v0 = vadd.f32 %v471_v59, %v456_v61  ;;  %v438_v2 = vpop.f32.mrb[4].mxu1  ;;  %v387_v3 = vpop.f32.mrb[5].mxu0 }
 0x104   :  { %v440_v4 = vpop.f32.mrb[5].mxu1  ;;  %v449_v6 = vmax.f32 %v385_v1, %v387_v3  ;;  %v389_v8 = vpop.f32.mrb[6].mxu0 }
 0x105   :  { %491 = vst [vmem:[%s774_s6] sm:$0xff] %v487_v63  ;;  %v488_v5 = vmax.f32 %v484_v0, 0.0  ;;  %v453_v7 = vmax.f32 %v438_v2, %v440_v4  ;;  %v442_v9 = vpop.f32.mrb[6].mxu1  ;;  %v391_v10 = vpop.f32.mrb[7].mxu0 }
 0x106   :  { %v444_v11 = vpop.f32.mrb[7].mxu1  ;;  %v450_v13 = vmax.f32 %v389_v8, %v391_v10 }
 0x107   :  { %492 = vst [vmem:[%s774_s6 + $0x8] sm:$0xff] %v488_v5  ;;  %v457_v12 = vmax.f32 %v449_v6, %v453_v7  ;;  %v454_v14 = vmax.f32 %v442_v9, %v444_v11 }
 0x109   :  { %v485_v15 = vadd.f32 %v476_v62, %v457_v12  ;;  %v458_v16 = vmax.f32 %v450_v13, %v454_v14 }
 0x10b   :  { %v489_v18 = vmax.f32 %v485_v15, 0.0  ;;  %v486_v19 = vadd.f32 %v481_v17, %v458_v16 }
 0x10d   :  { %493 = vst [vmem:[%s774_s6 + $0x10] sm:$0xff] %v489_v18  ;;  %v490_v20 = vmax.f32 %v486_v19, 0.0 }
 0x10f   :  { %494 = vst [vmem:[%s774_s6 + $0x18] sm:$0xff] %v490_v20 }

// kernel: critic_forward.5
= control target key start
LH: loop header
LB: loop body
LE: loop exit
PB: predicated region body
PF: predicated region fallthrough
CT: control target
= control target key end

     0   :  { %s5619_s0 = inlined_call_operand.vmem [shape: f32[1,4096], index: 0, kind: input, shape index: {}]   ;;  %s5620_s1 = inlined_call_operand.vmem [shape: bf16[4096,128], index: 1, kind: input, shape index: {}]   ;;  %s5621_s2 = inlined_call_operand.vmem [shape: f32[1,128], index: 2, kind: input, shape index: {}]   ;;  %s5622_s3 = inlined_call_operand.vmem [shape: f32[128,10], index: 3, kind: input, shape index: {}]   ;;  %s5623_s4 = inlined_call_operand.vmem [shape: f32[1,10], index: 4, kind: input, shape index: {}]   ;;  %s5624_s5 = inlined_call_operand.vmem [shape: f32[1,8], index: 5, kind: input, shape index: {}]   ;;  %s5625_s6 = inlined_call_operand.vmem [shape: f32[1,4], index: 6, kind: input, shape index: {}]   ;;  %s5626_s7 = inlined_call_operand.vmem [shape: f32[10,32], index: 7, kind: input, shape index: {}]   ;;  %s5627_s8 = inlined_call_operand.vmem [shape: f32[8,32], index: 8, kind: input, shape index: {}]   ;;  %s5628_s9 = inlined_call_operand.vmem [shape: f32[4,32], index: 9, kind: input, shape index: {}]   ;;  %s5629_s10 = inlined_call_operand.vmem [shape: f32[1,32], index: 10, kind: input, shape index: {}]   ;;  %s5630_s11 = inlined_call_operand.vmem [shape: f32[32,32], index: 11, kind: input, shape index: {}]   ;;  %s5631_s12 = inlined_call_operand.vmem [shape: f32[1,32], index: 12, kind: input, shape index: {}]   ;;  %s5632_s13 = inlined_call_operand.vmem [shape: f32[32,1], index: 13, kind: input, shape index: {}]   ;;  %s5633_s14 = inlined_call_operand.<no memory space> [shape: f32[1,1], index: 14, kind: input, shape index: {}]   ;;  %s5634_s15 = inlined_call_operand.hbm [shape: f32[1,1], index: 15, kind: output, shape index: {}]  }
   0x1   :  { %v20_v0 = vstv %s5633_s14 }
   0x2   :  { %21 = vst [vmem:[#allocation3] sm:$0x1] %v20_v0 }
   0x3   :  { %v4229_v1 = vld [vmem:[%s5620_s1 + $0x40] sm:$0xff]   ;;  %v4233_v5 = vld [vmem:[%s5620_s1 + $0x48] sm:$0xff]   ;;  %v4237_v9 = vld [vmem:[%s5620_s1 + $0x50] sm:$0xff]   ;;  %v68_v19 = vlaneseq }
   0x4   :  { %v4230_v2 = vld [vmem:[%s5620_s1 + $0xc0] sm:$0xff]   ;;  %3724 = vmatprep.subr.bf16.mxu0 %v4229_v1  ;;  %v4234_v6 = vld [vmem:[%s5620_s1 + $0xc8] sm:$0xff]   ;;  %v4238_v10 = vld [vmem:[%s5620_s1 + $0xd0] sm:$0xff]  }
   0x5   :  { %v4231_v3 = vld [vmem:[%s5620_s1] sm:$0xff]   ;;  %3746 = vmatprep.subr.bf16.mxu1 %v4230_v2  ;;  %v4235_v7 = vld [vmem:[%s5620_s1 + $0x8] sm:$0xff]   ;;  %v4239_v11 = vld [vmem:[%s5620_s1 + $0x10] sm:$0xff]   ;;  %v4663_v24 = vshrl.u32 %v68_v19, 7 }
   0x6   :  { %v4232_v4 = vld [vmem:[%s5620_s1 + $0x80] sm:$0xff]   ;;  %3725 = vmatpush3.bf16.msra.mxu0 %v4231_v3  ;;  %v4236_v8 = vld [vmem:[%s5620_s1 + $0x88] sm:$0xff]   ;;  %v4240_v12 = vld [vmem:[%s5620_s1 + $0x90] sm:$0xff]  }
   0x7   :  { %3747 = vmatpush3.bf16.msra.mxu1 %v4232_v4  ;;  %3726 = vmatprep.subr.bf16.mxu0 %v4233_v5  ;;  %v4241_v13 = vld [vmem:[%s5620_s1 + $0x58] sm:$0xff]   ;;  %v4245_v17 = vld [vmem:[%s5620_s1 + $0x60] sm:$0xff]   ;;  %v4249_v22 = vld [vmem:[%s5620_s1 + $0x68] sm:$0xff]   ;;  %v4678_v29 = vsub.s32 1, %v4663_v24  ;;  %v4684_v31 = vsub.s32 3, %v4663_v24  ;;  %v4690_v33 = vsub.s32 0, %v4663_v24 }
   0x8   :  { %3748 = vmatprep.subr.bf16.mxu1 %v4234_v6  ;;  %v4242_v14 = vld [vmem:[%s5620_s1 + $0xd8] sm:$0xff]   ;;  %v4246_v18 = vld [vmem:[%s5620_s1 + $0xe0] sm:$0xff]   ;;  %v4250_v23 = vld [vmem:[%s5620_s1 + $0xe8] sm:$0xff]   ;;  %v4696_v35 = vsub.s32 2, %v4663_v24  ;;  %v4702_v37 = vsub.s32 5, %v4663_v24  ;;  %v4708_v39 = vsub.s32 7, %v4663_v24 }
   0x9   :  { %v4243_v15 = vld [vmem:[%s5620_s1 + $0x18] sm:$0xff]   ;;  %v4247_v20 = vld [vmem:[%s5620_s1 + $0x20] sm:$0xff]   ;;  %v4251_v25 = vld [vmem:[%s5620_s1 + $0x28] sm:$0xff]  }
   0xa   :  { %3727 = vmatpush3.bf16.msra.mxu0 %v4235_v7  ;;  %v4244_v16 = vld [vmem:[%s5620_s1 + $0x98] sm:$0xff]   ;;  %v4248_v21 = vld [vmem:[%s5620_s1 + $0xa0] sm:$0xff]   ;;  %v4252_v26 = vld [vmem:[%s5620_s1 + $0xa8] sm:$0xff]  }
   0xb   :  { %3749 = vmatpush3.bf16.msra.mxu1 %v4236_v8  ;;  %3728 = vmatprep.subr.bf16.mxu0 %v4237_v9  ;;  %v4253_v27 = vld [vmem:[%s5620_s1 + $0x70] sm:$0xff]   ;;  %v4257_v34 = vld [vmem:[%s5620_s1 + $0x78] sm:$0xff]   ;;  %v4716_v41 = vld [vmem:[%s5619_s0] sm:$0xff] }
   0xc   :  { %3750 = vmatprep.subr.bf16.mxu1 %v4238_v10  ;;  %v4254_v28 = vld [vmem:[%s5620_s1 + $0xf0] sm:$0xff]   ;;  %v4258_v36 = vld [vmem:[%s5620_s1 + $0xf8] sm:$0xff]   ;;  %v75_v42 = vrot.slane %v4716_v41, %v4678_v29  ;;  %v83_v43 = vrot.slane %v4716_v41, %v4684_v31  ;;  %v71_v44 = vrot.slane %v4716_v41, %v4690_v33  ;;  %v79_v45 = vrot.slane %v4716_v41, %v4696_v35  ;;  %v4261_v46 = vld [vmem:[%s5620_s1 + $0x140] sm:$0xff]  }
   0xd   :  { %v4255_v30 = vld [vmem:[%s5620_s1 + $0x30] sm:$0xff]   ;;  %v4259_v38 = vld [vmem:[%s5620_s1 + $0x38] sm:$0xff]   ;;  %v4262_v47 = vld [vmem:[%s5620_s1 + $0x1c0] sm:$0xff]   ;;  %v91_v48 = vrot.slane %v4716_v41, %v4702_v37  ;;  %v99_v49 = vrot.slane %v4716_v41, %v4708_v39 }
   0xe   :  { %3729 = vmatpush3.bf16.msra.mxu0 %v4239_v11  ;;  %v4256_v32 = vld [vmem:[%s5620_s1 + $0xb0] sm:$0xff]   ;;  %v4260_v40 = vld [vmem:[%s5620_s1 + $0xb8] sm:$0xff]   ;;  %v229_v50 = vpack.c.bf16 %v75_v42, %v75_v42  ;;  %v231_v51 = vpack.c.bf16 %v83_v43, %v83_v43  ;;  %v228_v52 = vpack.c.bf16 %v71_v44, %v71_v44  ;;  %v230_v53 = vpack.c.bf16 %v79_v45, %v79_v45  ;;  %v4263_v54 = vld [vmem:[%s5620_s1 + $0x100] sm:$0xff]  }
   0xf   :  { %3751 = vmatpush3.bf16.msra.mxu1 %v4240_v12  ;;  %3730 = vmatprep.subr.bf16.mxu0 %v4241_v13  ;;  %v4264_v55 = vld [vmem:[%s5620_s1 + $0x180] sm:$0xff]   ;;  %v4265_v56 = vld [vmem:[%s5620_s1 + $0x148] sm:$0xff]   ;;  %v233_v57 = vpack.c.bf16 %v91_v48, %v91_v48  ;;  %v235_v58 = vpack.c.bf16 %v99_v49, %v99_v49  ;;  %v4269_v62 = vld [vmem:[%s5620_s1 + $0x150] sm:$0xff]  }
  0x10   :  { %3752 = vmatprep.subr.bf16.mxu1 %v4242_v14  ;;  %2340 = vmatprep.mubr.bf16.mxu0 %v229_v50  ;;  %v4266_v59 = vld [vmem:[%s5620_s1 + $0x1c8] sm:$0xff]   ;;  %v4270_v63 = vld [vmem:[%s5620_s1 + $0x1d0] sm:$0xff]   ;;  %v4273_v2 = vld [vmem:[%s5620_s1 + $0x158] sm:$0xff]  }
  0x11   :  { %2380 = vmatprep.mubr.bf16.mxu1 %v231_v51  ;;  %v4267_v60 = vld [vmem:[%s5620_s1 + $0x108] sm:$0xff]   ;;  %v4271_v0 = vld [vmem:[%s5620_s1 + $0x110] sm:$0xff]   ;;  %v4274_v3 = vld [vmem:[%s5620_s1 + $0x1d8] sm:$0xff]  }
  0x12   :  { %3731 = vmatpush3.bf16.msra.mxu0 %v4243_v15  ;;  %v4268_v61 = vld [vmem:[%s5620_s1 + $0x188] sm:$0xff]   ;;  %v4272_v1 = vld [vmem:[%s5620_s1 + $0x190] sm:$0xff]   ;;  %v4275_v4 = vld [vmem:[%s5620_s1 + $0x118] sm:$0xff]   ;;  %v4806_v15 = vsub.s32 4, %v4663_v24 }
  0x13   :  { %3753 = vmatpush3.bf16.msra.mxu1 %v4244_v16  ;;  %3732 = vmatprep.subr.bf16.mxu0 %v4245_v17  ;;  %v4276_v5 = vld [vmem:[%s5620_s1 + $0x198] sm:$0xff]   ;;  %v4277_v6 = vld [vmem:[%s5620_s1 + $0x160] sm:$0xff]   ;;  %v4281_v10 = vld [vmem:[%s5620_s1 + $0x168] sm:$0xff]   ;;  %v4812_v17 = vsub.s32 6, %v4663_v24 }
  0x14   :  { %3754 = vmatprep.subr.bf16.mxu1 %v4246_v18  ;;  %v4278_v7 = vld [vmem:[%s5620_s1 + $0x1e0] sm:$0xff]   ;;  %v4282_v11 = vld [vmem:[%s5620_s1 + $0x1e8] sm:$0xff]   ;;  %v4285_v14 = vld [vmem:[%s5620_s1 + $0x170] sm:$0xff]  }
  0x15   :  { %v4279_v8 = vld [vmem:[%s5620_s1 + $0x120] sm:$0xff]   ;;  %v4283_v12 = vld [vmem:[%s5620_s1 + $0x128] sm:$0xff]   ;;  %v4286_v16 = vld [vmem:[%s5620_s1 + $0x1f0] sm:$0xff]  }
  0x16   :  { %3733 = vmatpush3.bf16.msra.mxu0 %v4247_v20  ;;  %v4280_v9 = vld [vmem:[%s5620_s1 + $0x1a0] sm:$0xff]   ;;  %v4284_v13 = vld [vmem:[%s5620_s1 + $0x1a8] sm:$0xff]   ;;  %v4287_v18 = vld [vmem:[%s5620_s1 + $0x130] sm:$0xff]  }
  0x17   :  { %3755 = vmatpush3.bf16.msra.mxu1 %v4248_v21  ;;  %3734 = vmatprep.subr.bf16.mxu0 %v4249_v22  ;;  %v4288_v19 = vld [vmem:[%s5620_s1 + $0x1b0] sm:$0xff]   ;;  %v4289_v20 = vld [vmem:[%s5620_s1 + $0x178] sm:$0xff]   ;;  %v87_v22 = vrot.slane %v4716_v41, %v4806_v15  ;;  %v4309_v50 = vld [vmem:[%s5620_s1 + $0x260] sm:$0xff]  }
  0x18   :  { %3756 = vmatprep.subr.bf16.mxu1 %v4250_v23  ;;  %v4290_v21 = vld [vmem:[%s5620_s1 + $0x1f8] sm:$0xff]   ;;  %v95_v23 = vrot.slane %v4716_v41, %v4812_v17  ;;  %v4300_v41 = vld [vmem:[%s5620_s1 + $0x288] sm:$0xff]   ;;  %v4301_v42 = vld [vmem:[%s5620_s1 + $0x250] sm:$0xff]  }
  0x19   :  { %v4291_v24 = vld [vmem:[%s5620_s1 + $0x138] sm:$0xff]   ;;  %v4302_v43 = vld [vmem:[%s5620_s1 + $0x2d0] sm:$0xff]   ;;  %v4310_v51 = vld [vmem:[%s5620_s1 + $0x2e0] sm:$0xff]  }
  0x1a   :  { %3735 = vmatpush3.bf16.msra.mxu0 %v4251_v25  ;;  %v4292_v25 = vld [vmem:[%s5620_s1 + $0x1b8] sm:$0xff]   ;;  %v4303_v44 = vld [vmem:[%s5620_s1 + $0x210] sm:$0xff]  }
  0x1b   :  { %3757 = vmatpush3.bf16.msra.mxu1 %v4252_v26  ;;  %3736 = vmatprep.subr.bf16.mxu0 %v4253_v27  ;;  %v4293_v26 = vld [vmem:[%s5620_s1 + $0x240] sm:$0xff]   ;;  %v232_v27 = vpack.c.bf16 %v87_v22, %v87_v22  ;;  %v4304_v45 = vld [vmem:[%s5620_s1 + $0x290] sm:$0xff]   ;;  %v4307_v48 = vld [vmem:[%s5620_s1 + $0x218] sm:$0xff]  }
  0x1c   :  { %3758 = vmatprep.subr.bf16.mxu1 %v4254_v28  ;;  %v234_v28 = vpack.c.bf16 %v95_v23, %v95_v23  ;;  %v4308_v49 = vld [vmem:[%s5620_s1 + $0x298] sm:$0xff]   ;;  %v4330_v22 = vld [vmem:[%s5620_s1 + $0x3c8] sm:$0xff]  }
  0x1d   :  { %v4331_v23 = vld [vmem:[%s5620_s1 + $0x308] sm:$0xff]  }
  0x1e   :  { %3737 = vmatpush3.bf16.msra.mxu0 %v4255_v30  ;;  %v4294_v30 = vld [vmem:[%s5620_s1 + $0x2c0] sm:$0xff]  }
  0x1f   :  { %3759 = vmatpush3.bf16.msra.mxu1 %v4256_v32  ;;  %3738 = vmatprep.subr.bf16.mxu0 %v4257_v34  ;;  %v4295_v32 = vld [vmem:[%s5620_s1 + $0x200] sm:$0xff]  }
  0x20   :  { %3760 = vmatprep.subr.bf16.mxu1 %v4258_v36  ;;  %v4296_v34 = vld [vmem:[%s5620_s1 + $0x280] sm:$0xff]   ;;  %v4297_v36 = vld [vmem:[%s5620_s1 + $0x248] sm:$0xff]  }
  0x22   :  { %3739 = vmatpush3.bf16.msra.mxu0 %v4259_v38  ;;  %v4298_v38 = vld [vmem:[%s5620_s1 + $0x2c8] sm:$0xff]  }
  0x23   :  { %3761 = vmatpush3.bf16.msra.mxu1 %v4260_v40  ;;  %3768 = vmatprep.subr.bf16.mxu0 %v4261_v46  ;;  %v4299_v40 = vld [vmem:[%s5620_s1 + $0x208] sm:$0xff]   ;;  %v4305_v46 = vld [vmem:[%s5620_s1 + $0x258] sm:$0xff]  }
  0x24   :  { %3790 = vmatprep.subr.bf16.mxu1 %v4262_v47  ;;  %v4306_v47 = vld [vmem:[%s5620_s1 + $0x2d8] sm:$0xff]  }
  0x25   :  { %2341 = vmatmul.mubr.bf16.vlgmr.msra.gmra.mrb[0].mxu0 %v228_v52  ;;  %v4311_v52 = vld [vmem:[%s5620_s1 + $0x220] sm:$0xff]  }
  0x26   :  { %2381 = vmatmul.mubr.bf16.vlgmr.msra.gmra.mrb[0].mxu1 %v230_v53  ;;  %3769 = vmatpush3.bf16.msra.mxu0 %v4263_v54  ;;  %v4312_v53 = vld [vmem:[%s5620_s1 + $0x2a0] sm:$0xff]   ;;  %v4313_v54 = vld [vmem:[%s5620_s1 + $0x268] sm:$0xff]  }
  0x27   :  { %3791 = vmatpush3.bf16.msra.mxu1 %v4264_v55  ;;  %3770 = vmatprep.subr.bf16.mxu0 %v4265_v56  ;;  %v4314_v55 = vld [vmem:[%s5620_s1 + $0x2e8] sm:$0xff]  }
  0x28   :  { %3792 = vmatprep.subr.bf16.mxu1 %v4266_v59  ;;  %2420 = vmatprep.mubr.bf16.mxu0 %v233_v57  ;;  %v4315_v56 = vld [vmem:[%s5620_s1 + $0x228] sm:$0xff]   ;;  %v4318_v59 = vld [vmem:[%s5620_s1 + $0x2f0] sm:$0xff]  }
  0x29   :  { %2460 = vmatprep.mubr.bf16.mxu1 %v235_v58  ;;  %v4316_v57 = vld [vmem:[%s5620_s1 + $0x2a8] sm:$0xff]   ;;  %v4317_v58 = vld [vmem:[%s5620_s1 + $0x270] sm:$0xff]  }
  0x2a   :  { %3771 = vmatpush3.bf16.msra.mxu0 %v4267_v60  ;;  %v4319_v60 = vld [vmem:[%s5620_s1 + $0x230] sm:$0xff]  }
  0x2b   :  { %3793 = vmatpush3.bf16.msra.mxu1 %v4268_v61  ;;  %3772 = vmatprep.subr.bf16.mxu0 %v4269_v62  ;;  %v4320_v61 = vld [vmem:[%s5620_s1 + $0x2b0] sm:$0xff]   ;;  %v4321_v62 = vld [vmem:[%s5620_s1 + $0x278] sm:$0xff]  }
  0x2c   :  { %3794 = vmatprep.subr.bf16.mxu1 %v4270_v63  ;;  %v4322_v63 = vld [vmem:[%s5620_s1 + $0x2f8] sm:$0xff]  }
  0x2e   :  { %3773 = vmatpush3.bf16.msra.mxu0 %v4271_v0  ;;  %v4323_v0 = vld [vmem:[%s5620_s1 + $0x238] sm:$0xff]  }
  0x2f   :  { %3795 = vmatpush3.bf16.msra.mxu1 %v4272_v1  ;;  %3774 = vmatprep.subr.bf16.mxu0 %v4273_v2  ;;  %v4324_v1 = vld [vmem:[%s5620_s1 + $0x2b8] sm:$0xff]   ;;  %v4935_v2 = vld [vmem:[%s5619_s0 + $0x8] sm:$0xff] }
  0x30   :  { %3796 = vmatprep.subr.bf16.mxu1 %v4274_v3  ;;  %v107_v3 = vrot.slane %v4935_v2, %v4678_v29 }
  0x32   :  { %3775 = vmatpush3.bf16.msra.mxu0 %v4275_v4  ;;  %v115_v4 = vrot.slane %v4935_v2, %v4684_v31 }
  0x33   :  { %3797 = vmatpush3.bf16.msra.mxu1 %v4276_v5  ;;  %3776 = vmatprep.subr.bf16.mxu0 %v4277_v6  ;;  %v103_v5 = vrot.slane %v4935_v2, %v4690_v33  ;;  %v111_v6 = vrot.slane %v4935_v2, %v4696_v35 }
  0x34   :  { %3798 = vmatprep.subr.bf16.mxu1 %v4278_v7  ;;  %v4325_v7 = vld [vmem:[%s5620_s1 + $0x340] sm:$0xff]  }
  0x36   :  { %3777 = vmatpush3.bf16.msra.mxu0 %v4279_v8  ;;  %v4326_v8 = vld [vmem:[%s5620_s1 + $0x3c0] sm:$0xff]  }
  0x37   :  { %3799 = vmatpush3.bf16.msra.mxu1 %v4280_v9  ;;  %3778 = vmatprep.subr.bf16.mxu0 %v4281_v10  ;;  %v123_v9 = vrot.slane %v4935_v2, %v4702_v37  ;;  %v131_v10 = vrot.slane %v4935_v2, %v4708_v39 }
  0x38   :  { %3800 = vmatprep.subr.bf16.mxu1 %v4282_v11  ;;  %v237_v11 = vpack.c.bf16 %v107_v3, %v107_v3  ;;  %v4365_v3 = vld [vmem:[%s5620_s1 + $0x450] sm:$0xff]  }
  0x3a   :  { %3779 = vmatpush3.bf16.msra.mxu0 %v4283_v12  ;;  %v239_v12 = vpack.c.bf16 %v115_v4, %v115_v4  ;;  %v4366_v4 = vld [vmem:[%s5620_s1 + $0x4d0] sm:$0xff]  }
  0x3b   :  { %3801 = vmatpush3.bf16.msra.mxu1 %v4284_v13  ;;  %3780 = vmatprep.subr.bf16.mxu0 %v4285_v14  ;;  %v236_v13 = vpack.c.bf16 %v103_v5, %v103_v5  ;;  %v4327_v14 = vld [vmem:[%s5620_s1 + $0x300] sm:$0xff]   ;;  %v4367_v5 = vld [vmem:[%s5620_s1 + $0x410] sm:$0xff]  }
  0x3c   :  { %3802 = vmatprep.subr.bf16.mxu1 %v4286_v16  ;;  %v238_v16 = vpack.c.bf16 %v111_v6, %v111_v6  ;;  %v4368_v6 = vld [vmem:[%s5620_s1 + $0x490] sm:$0xff]  }
  0x3e   :  { %3781 = vmatpush3.bf16.msra.mxu0 %v4287_v18  ;;  %v4328_v18 = vld [vmem:[%s5620_s1 + $0x380] sm:$0xff]  }
  0x3f   :  { %3803 = vmatpush3.bf16.msra.mxu1 %v4288_v19  ;;  %3782 = vmatprep.subr.bf16.mxu0 %v4289_v20  ;;  %v4329_v19 = vld [vmem:[%s5620_s1 + $0x348] sm:$0xff]   ;;  %v241_v20 = vpack.c.bf16 %v123_v9, %v123_v9  ;;  %v4371_v9 = vld [vmem:[%s5620_s1 + $0x418] sm:$0xff]  }
  0x40   :  { %3804 = vmatprep.subr.bf16.mxu1 %v4290_v21  ;;  %v243_v21 = vpack.c.bf16 %v131_v10, %v131_v10  ;;  %v4372_v10 = vld [vmem:[%s5620_s1 + $0x498] sm:$0xff]  }
  0x42   :  { %3783 = vmatpush3.bf16.msra.mxu0 %v4291_v24  ;;  %v4332_v24 = vld [vmem:[%s5620_s1 + $0x388] sm:$0xff]  }
  0x43   :  { %3805 = vmatpush3.bf16.msra.mxu1 %v4292_v25  ;;  %3812 = vmatprep.subr.bf16.mxu0 %v4293_v26  ;;  %v4333_v25 = vld [vmem:[%s5620_s1 + $0x350] sm:$0xff]  }
  0x44   :  { %3834 = vmatprep.subr.bf16.mxu1 %v4294_v30  ;;  %v4334_v26 = vld [vmem:[%s5620_s1 + $0x3d0] sm:$0xff]   ;;  %v4337_v30 = vld [vmem:[%s5620_s1 + $0x358] sm:$0xff]  }
  0x45   :  { %2421 = vmatmul.mubr.bf16.vlgmr.msra.gmra.mrb[4].mxu0 %v232_v27  ;;  %v4335_v27 = vld [vmem:[%s5620_s1 + $0x310] sm:$0xff]  }
  0x46   :  { %2461 = vmatmul.mubr.bf16.vlgmr.msra.gmra.mrb[4].mxu1 %v234_v28  ;;  %3813 = vmatpush3.bf16.msra.mxu0 %v4295_v32  ;;  %v4336_v28 = vld [vmem:[%s5620_s1 + $0x390] sm:$0xff]   ;;  %v4338_v32 = vld [vmem:[%s5620_s1 + $0x3d8] sm:$0xff]  }
  0x47   :  { %3835 = vmatpush3.bf16.msra.mxu1 %v4296_v34  ;;  %3814 = vmatprep.subr.bf16.mxu0 %v4297_v36  ;;  %v4339_v34 = vld [vmem:[%s5620_s1 + $0x318] sm:$0xff]  }
  0x48   :  { %3836 = vmatprep.subr.bf16.mxu1 %v4298_v38  ;;  %2500 = vmatprep.mubr.bf16.mxu0 %v237_v11  ;;  %v4340_v36 = vld [vmem:[%s5620_s1 + $0x398] sm:$0xff]   ;;  %v4341_v38 = vld [vmem:[%s5620_s1 + $0x360] sm:$0xff]  }
  0x49   :  { %2540 = vmatprep.mubr.bf16.mxu1 %v239_v12  ;;  %v4373_v11 = vld [vmem:[%s5620_s1 + $0x460] sm:$0xff]  }
  0x4a   :  { %3815 = vmatpush3.bf16.msra.mxu0 %v4299_v40  ;;  %v4342_v40 = vld [vmem:[%s5620_s1 + $0x3e0] sm:$0xff]  }
  0x4b   :  { %3837 = vmatpush3.bf16.msra.mxu1 %v4300_v41  ;;  %3816 = vmatprep.subr.bf16.mxu0 %v4301_v42  ;;  %v4343_v41 = vld [vmem:[%s5620_s1 + $0x320] sm:$0xff]  }
  0x4c   :  { %3838 = vmatprep.subr.bf16.mxu1 %v4302_v43  ;;  %v4344_v42 = vld [vmem:[%s5620_s1 + $0x3a0] sm:$0xff]   ;;  %v4345_v43 = vld [vmem:[%s5620_s1 + $0x368] sm:$0xff]  }
  0x4d   :  { %v4374_v12 = vld [vmem:[%s5620_s1 + $0x4e0] sm:$0xff]  }
  0x4e   :  { %3817 = vmatpush3.bf16.msra.mxu0 %v4303_v44  ;;  %v4346_v44 = vld [vmem:[%s5620_s1 + $0x3e8] sm:$0xff]  }
  0x4f   :  { %3839 = vmatpush3.bf16.msra.mxu1 %v4304_v45  ;;  %3818 = vmatprep.subr.bf16.mxu0 %v4305_v46  ;;  %v4347_v45 = vld [vmem:[%s5620_s1 + $0x328] sm:$0xff]  }
  0x50   :  { %3840 = vmatprep.subr.bf16.mxu1 %v4306_v47  ;;  %v4348_v46 = vld [vmem:[%s5620_s1 + $0x3a8] sm:$0xff]   ;;  %v4349_v47 = vld [vmem:[%s5620_s1 + $0x370] sm:$0xff]  }
  0x52   :  { %3819 = vmatpush3.bf16.msra.mxu0 %v4307_v48  ;;  %v4350_v48 = vld [vmem:[%s5620_s1 + $0x3f0] sm:$0xff]  }
  0x53   :  { %3841 = vmatpush3.bf16.msra.mxu1 %v4308_v49  ;;  %3820 = vmatprep.subr.bf16.mxu0 %v4309_v50  ;;  %v4351_v49 = vld [vmem:[%s5620_s1 + $0x330] sm:$0xff]  }
  0x54   :  { %3842 = vmatprep.subr.bf16.mxu1 %v4310_v51  ;;  %v4352_v50 = vld [vmem:[%s5620_s1 + $0x3b0] sm:$0xff]   ;;  %v4353_v51 = vld [vmem:[%s5620_s1 + $0x378] sm:$0xff]  }
  0x56   :  { %3821 = vmatpush3.bf16.msra.mxu0 %v4311_v52  ;;  %v4354_v52 = vld [vmem:[%s5620_s1 + $0x3f8] sm:$0xff]  }
  0x57   :  { %3843 = vmatpush3.bf16.msra.mxu1 %v4312_v53  ;;  %3822 = vmatprep.subr.bf16.mxu0 %v4313_v54  ;;  %v119_v53 = vrot.slane %v4935_v2, %v4806_v15  ;;  %v127_v54 = vrot.slane %v4935_v2, %v4812_v17  ;;  %v4364_v2 = vld [vmem:[%s5620_s1 + $0x488] sm:$0xff]  }
  0x58   :  { %3844 = vmatprep.subr.bf16.mxu1 %v4314_v55  ;;  %v4355_v55 = vld [vmem:[%s5620_s1 + $0x338] sm:$0xff]  }
  0x5a   :  { %3823 = vmatpush3.bf16.msra.mxu0 %v4315_v56  ;;  %v4356_v56 = vld [vmem:[%s5620_s1 + $0x3b8] sm:$0xff]  }
  0x5b   :  { %3845 = vmatpush3.bf16.msra.mxu1 %v4316_v57  ;;  %3824 = vmatprep.subr.bf16.mxu0 %v4317_v58  ;;  %v4357_v57 = vld [vmem:[%s5620_s1 + $0x440] sm:$0xff]   ;;  %v240_v58 = vpack.c.bf16 %v119_v53, %v119_v53  ;;  %v4394_v53 = vld [vmem:[%s5620_s1 + $0x5c8] sm:$0xff]  }
  0x5c   :  { %3846 = vmatprep.subr.bf16.mxu1 %v4318_v59  ;;  %v242_v59 = vpack.c.bf16 %v127_v54, %v127_v54  ;;  %v4395_v54 = vld [vmem:[%s5620_s1 + $0x508] sm:$0xff]  }
  0x5e   :  { %3825 = vmatpush3.bf16.msra.mxu0 %v4319_v60  ;;  %v4358_v60 = vld [vmem:[%s5620_s1 + $0x4c0] sm:$0xff]  }
  0x5f   :  { %3847 = vmatpush3.bf16.msra.mxu1 %v4320_v61  ;;  %3826 = vmatprep.subr.bf16.mxu0 %v4321_v62  ;;  %v4359_v61 = vld [vmem:[%s5620_s1 + $0x400] sm:$0xff]  }
  0x60   :  { %3848 = vmatprep.subr.bf16.mxu1 %v4322_v63  ;;  %v4360_v62 = vld [vmem:[%s5620_s1 + $0x480] sm:$0xff]   ;;  %v4361_v63 = vld [vmem:[%s5620_s1 + $0x448] sm:$0xff]  }
  0x62   :  { %3827 = vmatpush3.bf16.msra.mxu0 %v4323_v0  ;;  %v4362_v0 = vld [vmem:[%s5620_s1 + $0x4c8] sm:$0xff]  }
  0x63   :  { %3849 = vmatpush3.bf16.msra.mxu1 %v4324_v1  ;;  %3856 = vmatprep.subr.bf16.mxu0 %v4325_v7  ;;  %v4363_v1 = vld [vmem:[%s5620_s1 + $0x408] sm:$0xff]   ;;  %v4369_v7 = vld [vmem:[%s5620_s1 + $0x458] sm:$0xff]  }
  0x64   :  { %3878 = vmatprep.subr.bf16.mxu1 %v4326_v8  ;;  %v4370_v8 = vld [vmem:[%s5620_s1 + $0x4d8] sm:$0xff]  }
  0x65   :  { %2501 = vmatmul.mubr.bf16.vlgmr.msra.gmra.mrb[8].mxu0 %v236_v13  ;;  %v4375_v13 = vld [vmem:[%s5620_s1 + $0x420] sm:$0xff]  }
  0x66   :  { %2541 = vmatmul.mubr.bf16.vlgmr.msra.gmra.mrb[8].mxu1 %v238_v16  ;;  %3857 = vmatpush3.bf16.msra.mxu0 %v4327_v14  ;;  %v4376_v14 = vld [vmem:[%s5620_s1 + $0x4a0] sm:$0xff]   ;;  %v4377_v16 = vld [vmem:[%s5620_s1 + $0x468] sm:$0xff]  }
  0x67   :  { %3879 = vmatpush3.bf16.msra.mxu1 %v4328_v18  ;;  %3858 = vmatprep.subr.bf16.mxu0 %v4329_v19  ;;  %v4378_v18 = vld [vmem:[%s5620_s1 + $0x4e8] sm:$0xff]  }
  0x68   :  { %3880 = vmatprep.subr.bf16.mxu1 %v4330_v22  ;;  %2580 = vmatprep.mubr.bf16.mxu0 %v241_v20  ;;  %v4379_v19 = vld [vmem:[%s5620_s1 + $0x428] sm:$0xff]   ;;  %v4382_v22 = vld [vmem:[%s5620_s1 + $0x4f0] sm:$0xff]  }
  0x69   :  { %2620 = vmatprep.mubr.bf16.mxu1 %v243_v21  ;;  %v4380_v20 = vld [vmem:[%s5620_s1 + $0x4a8] sm:$0xff]   ;;  %v4381_v21 = vld [vmem:[%s5620_s1 + $0x470] sm:$0xff]  }
  0x6a   :  { %3859 = vmatpush3.bf16.msra.mxu0 %v4331_v23  ;;  %v4383_v23 = vld [vmem:[%s5620_s1 + $0x430] sm:$0xff]  }
  0x6b   :  { %3881 = vmatpush3.bf16.msra.mxu1 %v4332_v24  ;;  %3860 = vmatprep.subr.bf16.mxu0 %v4333_v25  ;;  %v4384_v24 = vld [vmem:[%s5620_s1 + $0x4b0] sm:$0xff]   ;;  %v4385_v25 = vld [vmem:[%s5620_s1 + $0x478] sm:$0xff]  }
  0x6c   :  { %3882 = vmatprep.subr.bf16.mxu1 %v4334_v26  ;;  %v4386_v26 = vld [vmem:[%s5620_s1 + $0x4f8] sm:$0xff]  }
  0x6e   :  { %3861 = vmatpush3.bf16.msra.mxu0 %v4335_v27  ;;  %v4387_v27 = vld [vmem:[%s5620_s1 + $0x438] sm:$0xff]  }
  0x6f   :  { %3883 = vmatpush3.bf16.msra.mxu1 %v4336_v28  ;;  %3862 = vmatprep.subr.bf16.mxu0 %v4337_v30  ;;  %v4388_v28 = vld [vmem:[%s5620_s1 + $0x4b8] sm:$0xff]   ;;  %v5148_v30 = vld [vmem:[%s5619_s0 + $0x10] sm:$0xff] }
  0x70   :  { %3884 = vmatprep.subr.bf16.mxu1 %v4338_v32  ;;  %v139_v32 = vrot.slane %v5148_v30, %v4678_v29 }
  0x72   :  { %3863 = vmatpush3.bf16.msra.mxu0 %v4339_v34  ;;  %v147_v34 = vrot.slane %v5148_v30, %v4684_v31 }
  0x73   :  { %3885 = vmatpush3.bf16.msra.mxu1 %v4340_v36  ;;  %3864 = vmatprep.subr.bf16.mxu0 %v4341_v38  ;;  %v135_v36 = vrot.slane %v5148_v30, %v4690_v33  ;;  %v143_v38 = vrot.slane %v5148_v30, %v4696_v35 }
  0x74   :  { %3886 = vmatprep.subr.bf16.mxu1 %v4342_v40  ;;  %v4389_v40 = vld [vmem:[%s5620_s1 + $0x540] sm:$0xff]  }
  0x76   :  { %3865 = vmatpush3.bf16.msra.mxu0 %v4343_v41  ;;  %v4390_v41 = vld [vmem:[%s5620_s1 + $0x5c0] sm:$0xff]  }
  0x77   :  { %3887 = vmatpush3.bf16.msra.mxu1 %v4344_v42  ;;  %3866 = vmatprep.subr.bf16.mxu0 %v4345_v43  ;;  %v155_v42 = vrot.slane %v5148_v30, %v4702_v37  ;;  %v163_v43 = vrot.slane %v5148_v30, %v4708_v39 }
  0x78   :  { %3888 = vmatprep.subr.bf16.mxu1 %v4346_v44  ;;  %v245_v44 = vpack.c.bf16 %v139_v32, %v139_v32  ;;  %v4429_v32 = vld [vmem:[%s5620_s1 + $0x650] sm:$0xff]  }
  0x7a   :  { %3867 = vmatpush3.bf16.msra.mxu0 %v4347_v45  ;;  %v247_v45 = vpack.c.bf16 %v147_v34, %v147_v34  ;;  %v4430_v34 = vld [vmem:[%s5620_s1 + $0x6d0] sm:$0xff]  }
  0x7b   :  { %3889 = vmatpush3.bf16.msra.mxu1 %v4348_v46  ;;  %3868 = vmatprep.subr.bf16.mxu0 %v4349_v47  ;;  %v244_v46 = vpack.c.bf16 %v135_v36, %v135_v36  ;;  %v4391_v47 = vld [vmem:[%s5620_s1 + $0x500] sm:$0xff]   ;;  %v4431_v36 = vld [vmem:[%s5620_s1 + $0x610] sm:$0xff]  }
  0x7c   :  { %3890 = vmatprep.subr.bf16.mxu1 %v4350_v48  ;;  %v246_v48 = vpack.c.bf16 %v143_v38, %v143_v38  ;;  %v4432_v38 = vld [vmem:[%s5620_s1 + $0x690] sm:$0xff]  }
  0x7e   :  { %3869 = vmatpush3.bf16.msra.mxu0 %v4351_v49  ;;  %v4392_v49 = vld [vmem:[%s5620_s1 + $0x580] sm:$0xff]  }
  0x7f   :  { %3891 = vmatpush3.bf16.msra.mxu1 %v4352_v50  ;;  %3870 = vmatprep.subr.bf16.mxu0 %v4353_v51  ;;  %v4393_v50 = vld [vmem:[%s5620_s1 + $0x548] sm:$0xff]   ;;  %v249_v51 = vpack.c.bf16 %v155_v42, %v155_v42  ;;  %v4435_v42 = vld [vmem:[%s5620_s1 + $0x618] sm:$0xff]  }
  0x80   :  { %3892 = vmatprep.subr.bf16.mxu1 %v4354_v52  ;;  %v251_v52 = vpack.c.bf16 %v163_v43, %v163_v43  ;;  %v4436_v43 = vld [vmem:[%s5620_s1 + $0x698] sm:$0xff]  }
  0x82   :  { %3871 = vmatpush3.bf16.msra.mxu0 %v4355_v55  ;;  %v4396_v55 = vld [vmem:[%s5620_s1 + $0x588] sm:$0xff]  }
  0x83   :  { %3893 = vmatpush3.bf16.msra.mxu1 %v4356_v56  ;;  %3900 = vmatprep.subr.bf16.mxu0 %v4357_v57  ;;  %v4397_v56 = vld [vmem:[%s5620_s1 + $0x550] sm:$0xff]  }
  0x84   :  { %3922 = vmatprep.subr.bf16.mxu1 %v4358_v60  ;;  %v4398_v57 = vld [vmem:[%s5620_s1 + $0x5d0] sm:$0xff]   ;;  %v4401_v60 = vld [vmem:[%s5620_s1 + $0x558] sm:$0xff]  }
  0x85   :  { %2581 = vmatmul.mubr.bf16.vlgmr.msra.gmra.mrb[12].mxu0 %v240_v58  ;;  %v4399_v58 = vld [vmem:[%s5620_s1 + $0x510] sm:$0xff]  }
  0x86   :  { %2621 = vmatmul.mubr.bf16.vlgmr.msra.gmra.mrb[12].mxu1 %v242_v59  ;;  %3901 = vmatpush3.bf16.msra.mxu0 %v4359_v61  ;;  %v4400_v59 = vld [vmem:[%s5620_s1 + $0x590] sm:$0xff]   ;;  %v4402_v61 = vld [vmem:[%s5620_s1 + $0x5d8] sm:$0xff]  }
  0x87   :  { %3923 = vmatpush3.bf16.msra.mxu1 %v4360_v62  ;;  %3902 = vmatprep.subr.bf16.mxu0 %v4361_v63  ;;  %v4403_v62 = vld [vmem:[%s5620_s1 + $0x518] sm:$0xff]  }
  0x88   :  { %3924 = vmatprep.subr.bf16.mxu1 %v4362_v0  ;;  %2660 = vmatprep.mubr.bf16.mxu0 %v245_v44  ;;  %v4404_v63 = vld [vmem:[%s5620_s1 + $0x598] sm:$0xff]   ;;  %v4405_v0 = vld [vmem:[%s5620_s1 + $0x560] sm:$0xff]  }
  0x89   :  { %2700 = vmatprep.mubr.bf16.mxu1 %v247_v45  ;;  %v4437_v44 = vld [vmem:[%s5620_s1 + $0x660] sm:$0xff]  }
  0x8a   :  { %3903 = vmatpush3.bf16.msra.mxu0 %v4363_v1  ;;  %v4406_v1 = vld [vmem:[%s5620_s1 + $0x5e0] sm:$0xff]  }
  0x8b   :  { %3925 = vmatpush3.bf16.msra.mxu1 %v4364_v2  ;;  %3904 = vmatprep.subr.bf16.mxu0 %v4365_v3  ;;  %v4407_v2 = vld [vmem:[%s5620_s1 + $0x520] sm:$0xff]  }
  0x8c   :  { %3926 = vmatprep.subr.bf16.mxu1 %v4366_v4  ;;  %v4408_v3 = vld [vmem:[%s5620_s1 + $0x5a0] sm:$0xff]   ;;  %v4409_v4 = vld [vmem:[%s5620_s1 + $0x568] sm:$0xff]  }
  0x8d   :  { %v4438_v45 = vld [vmem:[%s5620_s1 + $0x6e0] sm:$0xff]  }
  0x8e   :  { %3905 = vmatpush3.bf16.msra.mxu0 %v4367_v5  ;;  %v4410_v5 = vld [vmem:[%s5620_s1 + $0x5e8] sm:$0xff]  }
  0x8f   :  { %3927 = vmatpush3.bf16.msra.mxu1 %v4368_v6  ;;  %3906 = vmatprep.subr.bf16.mxu0 %v4369_v7  ;;  %v4411_v6 = vld [vmem:[%s5620_s1 + $0x528] sm:$0xff]  }
  0x90   :  { %3928 = vmatprep.subr.bf16.mxu1 %v4370_v8  ;;  %v4412_v7 = vld [vmem:[%s5620_s1 + $0x5a8] sm:$0xff]   ;;  %v4413_v8 = vld [vmem:[%s5620_s1 + $0x570] sm:$0xff]  }
  0x92   :  { %3907 = vmatpush3.bf16.msra.mxu0 %v4371_v9  ;;  %v4414_v9 = vld [vmem:[%s5620_s1 + $0x5f0] sm:$0xff]  }
  0x93   :  { %3929 = vmatpush3.bf16.msra.mxu1 %v4372_v10  ;;  %3908 = vmatprep.subr.bf16.mxu0 %v4373_v11  ;;  %v4415_v10 = vld [vmem:[%s5620_s1 + $0x530] sm:$0xff]  }
  0x94   :  { %3930 = vmatprep.subr.bf16.mxu1 %v4374_v12  ;;  %v4416_v11 = vld [vmem:[%s5620_s1 + $0x5b0] sm:$0xff]   ;;  %v4417_v12 = vld [vmem:[%s5620_s1 + $0x578] sm:$0xff]  }
  0x96   :  { %3909 = vmatpush3.bf16.msra.mxu0 %v4375_v13  ;;  %v4418_v13 = vld [vmem:[%s5620_s1 + $0x5f8] sm:$0xff]  }
  0x97   :  { %3931 = vmatpush3.bf16.msra.mxu1 %v4376_v14  ;;  %3910 = vmatprep.subr.bf16.mxu0 %v4377_v16  ;;  %v151_v14 = vrot.slane %v5148_v30, %v4806_v15  ;;  %v159_v16 = vrot.slane %v5148_v30, %v4812_v17  ;;  %v4428_v30 = vld [vmem:[%s5620_s1 + $0x688] sm:$0xff]  }
  0x98   :  { %3932 = vmatprep.subr.bf16.mxu1 %v4378_v18  ;;  %v4419_v18 = vld [vmem:[%s5620_s1 + $0x538] sm:$0xff]  }
  0x9a   :  { %3911 = vmatpush3.bf16.msra.mxu0 %v4379_v19  ;;  %v4420_v19 = vld [vmem:[%s5620_s1 + $0x5b8] sm:$0xff]  }
  0x9b   :  { %3933 = vmatpush3.bf16.msra.mxu1 %v4380_v20  ;;  %3912 = vmatprep.subr.bf16.mxu0 %v4381_v21  ;;  %v4421_v20 = vld [vmem:[%s5620_s1 + $0x640] sm:$0xff]   ;;  %v248_v21 = vpack.c.bf16 %v151_v14, %v151_v14  ;;  %v4464_v14 = vld [vmem:[%s5620_s1 + $0x790] sm:$0xff]  }
  0x9c   :  { %3934 = vmatprep.subr.bf16.mxu1 %v4382_v22  ;;  %v250_v22 = vpack.c.bf16 %v159_v16, %v159_v16  ;;  %v4465_v16 = vld [vmem:[%s5620_s1 + $0x758] sm:$0xff]  }
  0x9e   :  { %3913 = vmatpush3.bf16.msra.mxu0 %v4383_v23  ;;  %v4422_v23 = vld [vmem:[%s5620_s1 + $0x6c0] sm:$0xff]  }
  0x9f   :  { %3935 = vmatpush3.bf16.msra.mxu1 %v4384_v24  ;;  %3914 = vmatprep.subr.bf16.mxu0 %v4385_v25  ;;  %v4423_v24 = vld [vmem:[%s5620_s1 + $0x600] sm:$0xff]  }
  0xa0   :  { %3936 = vmatprep.subr.bf16.mxu1 %v4386_v26  ;;  %v4424_v25 = vld [vmem:[%s5620_s1 + $0x680] sm:$0xff]   ;;  %v4425_v26 = vld [vmem:[%s5620_s1 + $0x648] sm:$0xff]  }
  0xa2   :  { %3915 = vmatpush3.bf16.msra.mxu0 %v4387_v27  ;;  %v4426_v27 = vld [vmem:[%s5620_s1 + $0x6c8] sm:$0xff]  }
  0xa3   :  { %3937 = vmatpush3.bf16.msra.mxu1 %v4388_v28  ;;  %3944 = vmatprep.subr.bf16.mxu0 %v4389_v40  ;;  %v4427_v28 = vld [vmem:[%s5620_s1 + $0x608] sm:$0xff]   ;;  %v4433_v40 = vld [vmem:[%s5620_s1 + $0x658] sm:$0xff]  }
  0xa4   :  { %3966 = vmatprep.subr.bf16.mxu1 %v4390_v41  ;;  %v4434_v41 = vld [vmem:[%s5620_s1 + $0x6d8] sm:$0xff]  }
  0xa5   :  { %2661 = vmatmul.mubr.bf16.vlgmr.msra.gmra.mrb[16].mxu0 %v244_v46  ;;  %v4439_v46 = vld [vmem:[%s5620_s1 + $0x620] sm:$0xff]  }
  0xa6   :  { %2701 = vmatmul.mubr.bf16.vlgmr.msra.gmra.mrb[16].mxu1 %v246_v48  ;;  %3945 = vmatpush3.bf16.msra.mxu0 %v4391_v47  ;;  %v4440_v47 = vld [vmem:[%s5620_s1 + $0x6a0] sm:$0xff]   ;;  %v4441_v48 = vld [vmem:[%s5620_s1 + $0x668] sm:$0xff]  }
  0xa7   :  { %3967 = vmatpush3.bf16.msra.mxu1 %v4392_v49  ;;  %3946 = vmatprep.subr.bf16.mxu0 %v4393_v50  ;;  %v4442_v49 = vld [vmem:[%s5620_s1 + $0x6e8] sm:$0xff]  }
  0xa8   :  { %3968 = vmatprep.subr.bf16.mxu1 %v4394_v53  ;;  %2740 = vmatprep.mubr.bf16.mxu0 %v249_v51  ;;  %v4443_v50 = vld [vmem:[%s5620_s1 + $0x628] sm:$0xff]   ;;  %v4446_v53 = vld [vmem:[%s5620_s1 + $0x6f0] sm:$0xff]  }
  0xa9   :  { %2780 = vmatprep.mubr.bf16.mxu1 %v251_v52  ;;  %v4444_v51 = vld [vmem:[%s5620_s1 + $0x6a8] sm:$0xff]   ;;  %v4445_v52 = vld [vmem:[%s5620_s1 + $0x670] sm:$0xff]  }
  0xaa   :  { %3947 = vmatpush3.bf16.msra.mxu0 %v4395_v54  ;;  %v4447_v54 = vld [vmem:[%s5620_s1 + $0x630] sm:$0xff]  }
  0xab   :  { %3969 = vmatpush3.bf16.msra.mxu1 %v4396_v55  ;;  %3948 = vmatprep.subr.bf16.mxu0 %v4397_v56  ;;  %v4448_v55 = vld [vmem:[%s5620_s1 + $0x6b0] sm:$0xff]   ;;  %v4449_v56 = vld [vmem:[%s5620_s1 + $0x678] sm:$0xff]  }
  0xac   :  { %3970 = vmatprep.subr.bf16.mxu1 %v4398_v57  ;;  %v4450_v57 = vld [vmem:[%s5620_s1 + $0x6f8] sm:$0xff]  }
  0xae   :  { %3949 = vmatpush3.bf16.msra.mxu0 %v4399_v58  ;;  %v4451_v58 = vld [vmem:[%s5620_s1 + $0x638] sm:$0xff]  }
  0xaf   :  { %3971 = vmatpush3.bf16.msra.mxu1 %v4400_v59  ;;  %3950 = vmatprep.subr.bf16.mxu0 %v4401_v60  ;;  %v4452_v59 = vld [vmem:[%s5620_s1 + $0x6b8] sm:$0xff]  }
  0xb0   :  { %3972 = vmatprep.subr.bf16.mxu1 %v4402_v61  ;;  %v5361_v60 = vld [vmem:[%s5619_s0 + $0x18] sm:$0xff] }
  0xb1   :  { %v171_v61 = vrot.slane %v5361_v60, %v4678_v29  ;;  %v187_v29 = vrot.slane %v5361_v60, %v4702_v37  ;;  %v4457_v37 = vld [vmem:[%s5620_s1 + $0x748] sm:$0xff]  }
  0xb2   :  { %3951 = vmatpush3.bf16.msra.mxu0 %v4403_v62  ;;  %v179_v62 = vrot.slane %v5361_v60, %v4684_v31  ;;  %v195_v31 = vrot.slane %v5361_v60, %v4708_v39 }
  0xb3   :  { %3973 = vmatpush3.bf16.msra.mxu1 %v4404_v63  ;;  %3952 = vmatprep.subr.bf16.mxu0 %v4405_v0  ;;  %v167_v63 = vrot.slane %v5361_v60, %v4690_v33  ;;  %v175_v0 = vrot.slane %v5361_v60, %v4696_v35  ;;  %v253_v33 = vpack.c.bf16 %v171_v61, %v171_v61 }
  0xb4   :  { %3974 = vmatprep.subr.bf16.mxu1 %v4406_v1  ;;  %v4453_v1 = vld [vmem:[%s5620_s1 + $0x740] sm:$0xff]   ;;  %v257_v39 = vpack.c.bf16 %v187_v29, %v187_v29 }
  0xb5   :  { %v254_v35 = vpack.c.bf16 %v175_v0, %v175_v0 }
  0xb6   :  { %3953 = vmatpush3.bf16.msra.mxu0 %v4407_v2  ;;  %v4454_v2 = vld [vmem:[%s5620_s1 + $0x7c0] sm:$0xff]  }
  0xb7   :  { %3975 = vmatpush3.bf16.msra.mxu1 %v4408_v3  ;;  %3954 = vmatprep.subr.bf16.mxu0 %v4409_v4  ;;  %v255_v3 = vpack.c.bf16 %v179_v62, %v179_v62  ;;  %v252_v4 = vpack.c.bf16 %v167_v63, %v167_v63 }
  0xb8   :  { %3976 = vmatprep.subr.bf16.mxu1 %v4410_v5  ;;  %v4455_v5 = vld [vmem:[%s5620_s1 + $0x700] sm:$0xff]  }
  0xba   :  { %3955 = vmatpush3.bf16.msra.mxu0 %v4411_v6  ;;  %v4456_v6 = vld [vmem:[%s5620_s1 + $0x780] sm:$0xff]  }
  0xbb   :  { %3977 = vmatpush3.bf16.msra.mxu1 %v4412_v7  ;;  %3956 = vmatprep.subr.bf16.mxu0 %v4413_v8  ;;  %v259_v7 = vpack.c.bf16 %v195_v31, %v195_v31  ;;  %v4458_v8 = vld [vmem:[%s5620_s1 + $0x7c8] sm:$0xff]  }
  0xbc   :  { %3978 = vmatprep.subr.bf16.mxu1 %v4414_v9  ;;  %v4459_v9 = vld [vmem:[%s5620_s1 + $0x708] sm:$0xff]  }
  0xbe   :  { %3957 = vmatpush3.bf16.msra.mxu0 %v4415_v10  ;;  %v4460_v10 = vld [vmem:[%s5620_s1 + $0x788] sm:$0xff]  }
  0xbf   :  { %3979 = vmatpush3.bf16.msra.mxu1 %v4416_v11  ;;  %3958 = vmatprep.subr.bf16.mxu0 %v4417_v12  ;;  %v4461_v11 = vld [vmem:[%s5620_s1 + $0x750] sm:$0xff]  }
  0xc0   :  { %3980 = vmatprep.subr.bf16.mxu1 %v4418_v13  ;;  %v4462_v12 = vld [vmem:[%s5620_s1 + $0x7d0] sm:$0xff]  }
  0xc1   :  { %v4463_v13 = vld [vmem:[%s5620_s1 + $0x710] sm:$0xff]  }
  0xc2   :  { %3959 = vmatpush3.bf16.msra.mxu0 %v4419_v18  ;;  %v4466_v18 = vld [vmem:[%s5620_s1 + $0x7d8] sm:$0xff]  }
  0xc3   :  { %3981 = vmatpush3.bf16.msra.mxu1 %v4420_v19  ;;  %3988 = vmatprep.subr.bf16.mxu0 %v4421_v20  ;;  %v4467_v19 = vld [vmem:[%s5620_s1 + $0x718] sm:$0xff]  }
  0xc4   :  { %4010 = vmatprep.subr.bf16.mxu1 %v4422_v23  ;;  %v4468_v20 = vld [vmem:[%s5620_s1 + $0x798] sm:$0xff]   ;;  %v4471_v23 = vld [vmem:[%s5620_s1 + $0x720] sm:$0xff]  }
  0xc5   :  { %2741 = vmatmul.mubr.bf16.vlgmr.msra.gmra.mrb[20].mxu0 %v248_v21  ;;  %v4469_v21 = vld [vmem:[%s5620_s1 + $0x760] sm:$0xff]  }
  0xc6   :  { %2781 = vmatmul.mubr.bf16.vlgmr.msra.gmra.mrb[20].mxu1 %v250_v22  ;;  %3989 = vmatpush3.bf16.msra.mxu0 %v4423_v24  ;;  %v4470_v22 = vld [vmem:[%s5620_s1 + $0x7e0] sm:$0xff]  }
  0xc7   :  { %4011 = vmatpush3.bf16.msra.mxu1 %v4424_v25  ;;  %3990 = vmatprep.subr.bf16.mxu0 %v4425_v26  ;;  %v4472_v24 = vld [vmem:[%s5620_s1 + $0x7a0] sm:$0xff]   ;;  %v4473_v25 = vld [vmem:[%s5620_s1 + $0x768] sm:$0xff]  }
  0xc8   :  { %4012 = vmatprep.subr.bf16.mxu1 %v4426_v27  ;;  %2820 = vmatprep.mubr.bf16.mxu0 %v253_v33  ;;  %v4474_v26 = vld [vmem:[%s5620_s1 + $0x7e8] sm:$0xff]  }
  0xc9   :  { %2860 = vmatprep.mubr.bf16.mxu1 %v255_v3  ;;  %v4475_v27 = vld [vmem:[%s5620_s1 + $0x728] sm:$0xff]  }
  0xca   :  { %3991 = vmatpush3.bf16.msra.mxu0 %v4427_v28 }
  0xcb   :  { %4013 = vmatpush3.bf16.msra.mxu1 %v4428_v30  ;;  %3992 = vmatprep.subr.bf16.mxu0 %v4429_v32  ;;  %v4476_v32 = vld [vmem:[%s5620_s1 + $0x7a8] sm:$0xff]  }
  0xcc   :  { %4014 = vmatprep.subr.bf16.mxu1 %v4430_v34  ;;  %v4477_v34 = vld [vmem:[%s5620_s1 + $0x770] sm:$0xff]  }
  0xce   :  { %3993 = vmatpush3.bf16.msra.mxu0 %v4431_v36 }
  0xcf   :  { %4015 = vmatpush3.bf16.msra.mxu1 %v4432_v38  ;;  %3994 = vmatprep.subr.bf16.mxu0 %v4433_v40 }
  0xd0   :  { %4016 = vmatprep.subr.bf16.mxu1 %v4434_v41 }
  0xd2   :  { %3995 = vmatpush3.bf16.msra.mxu0 %v4435_v42 }
  0xd3   :  { %4017 = vmatpush3.bf16.msra.mxu1 %v4436_v43  ;;  %3996 = vmatprep.subr.bf16.mxu0 %v4437_v44  ;;  %v4478_v44 = vld [vmem:[%s5620_s1 + $0x7f0] sm:$0xff]  }
  0xd4   :  { %4018 = vmatprep.subr.bf16.mxu1 %v4438_v45  ;;  %v4479_v45 = vld [vmem:[%s5620_s1 + $0x730] sm:$0xff]  }
  0xd6   :  { %3997 = vmatpush3.bf16.msra.mxu0 %v4439_v46 }
  0xd7   :  { %4019 = vmatpush3.bf16.msra.mxu1 %v4440_v47  ;;  %3998 = vmatprep.subr.bf16.mxu0 %v4441_v48 }
  0xd8   :  { %4020 = vmatprep.subr.bf16.mxu1 %v4442_v49  ;;  %v4480_v49 = vld [vmem:[%s5620_s1 + $0x7b0] sm:$0xff]  }
  0xda   :  { %3999 = vmatpush3.bf16.msra.mxu0 %v4443_v50  ;;  %v4481_v50 = vld [vmem:[%s5620_s1 + $0x778] sm:$0xff]  }
  0xdb   :  { %4021 = vmatpush3.bf16.msra.mxu1 %v4444_v51  ;;  %4000 = vmatprep.subr.bf16.mxu0 %v4445_v52  ;;  %v4482_v51 = vld [vmem:[%s5620_s1 + $0x7f8] sm:$0xff]   ;;  %v183_v52 = vrot.slane %v5361_v60, %v4806_v15 }
  0xdc   :  { %4022 = vmatprep.subr.bf16.mxu1 %v4446_v53  ;;  %v191_v53 = vrot.slane %v5361_v60, %v4812_v17 }
  0xde   :  { %4001 = vmatpush3.bf16.msra.mxu0 %v4447_v54  ;;  %v4483_v54 = vld [vmem:[%s5620_s1 + $0x738] sm:$0xff]  }
  0xdf   :  { %4023 = vmatpush3.bf16.msra.mxu1 %v4448_v55  ;;  %4002 = vmatprep.subr.bf16.mxu0 %v4449_v56  ;;  %v4484_v55 = vld [vmem:[%s5620_s1 + $0x7b8] sm:$0xff]  }
  0xe0   :  { %4024 = vmatprep.subr.bf16.mxu1 %v4450_v57 }
  0xe2   :  { %4003 = vmatpush3.bf16.msra.mxu0 %v4451_v58 }
  0xe3   :  { %4025 = vmatpush3.bf16.msra.mxu1 %v4452_v59  ;;  %4032 = vmatprep.subr.bf16.mxu0 %v4453_v1 }
  0xe4   :  { %4054 = vmatprep.subr.bf16.mxu1 %v4454_v2 }
  0xe5   :  { %2821 = vmatmul.mubr.bf16.vlgmr.msra.gmra.mrb[24].mxu0 %v252_v4 }
  0xe6   :  { %2861 = vmatmul.mubr.bf16.vlgmr.msra.gmra.mrb[24].mxu1 %v254_v35  ;;  %4033 = vmatpush3.bf16.msra.mxu0 %v4455_v5 }
  0xe7   :  { %4055 = vmatpush3.bf16.msra.mxu1 %v4456_v6  ;;  %4034 = vmatprep.subr.bf16.mxu0 %v4457_v37 }
  0xe8   :  { %4056 = vmatprep.subr.bf16.mxu1 %v4458_v8  ;;  %2900 = vmatprep.mubr.bf16.mxu0 %v257_v39 }
  0xe9   :  { %2940 = vmatprep.mubr.bf16.mxu1 %v259_v7 }
  0xea   :  { %4035 = vmatpush3.bf16.msra.mxu0 %v4459_v9 }
  0xeb   :  { %4057 = vmatpush3.bf16.msra.mxu1 %v4460_v10  ;;  %4036 = vmatprep.subr.bf16.mxu0 %v4461_v11 }
  0xec   :  { %4058 = vmatprep.subr.bf16.mxu1 %v4462_v12 }
  0xee   :  { %4037 = vmatpush3.bf16.msra.mxu0 %v4463_v13 }
  0xef   :  { %4059 = vmatpush3.bf16.msra.mxu1 %v4464_v14  ;;  %4038 = vmatprep.subr.bf16.mxu0 %v4465_v16 }
  0xf0   :  { %4060 = vmatprep.subr.bf16.mxu1 %v4466_v18 }
  0xf2   :  { %4039 = vmatpush3.bf16.msra.mxu0 %v4467_v19 }
  0xf3   :  { %4061 = vmatpush3.bf16.msra.mxu1 %v4468_v20  ;;  %4040 = vmatprep.subr.bf16.mxu0 %v4469_v21 }
  0xf4   :  { %4062 = vmatprep.subr.bf16.mxu1 %v4470_v22 }
  0xf6   :  { %4041 = vmatpush3.bf16.msra.mxu0 %v4471_v23 }
  0xf7   :  { %4063 = vmatpush3.bf16.msra.mxu1 %v4472_v24  ;;  %4042 = vmatprep.subr.bf16.mxu0 %v4473_v25 }
  0xf8   :  { %v3740_v28 = vpop.f32.mrb[0].mxu0  ;;  %4064 = vmatprep.subr.bf16.mxu1 %v4474_v26 }
  0xf9   :  { %v3762_v30 = vpop.f32.mrb[0].mxu1  ;;  %v3741_v36 = vpop.f32.mrb[1].mxu0 }
  0xfa   :  { %v3763_v38 = vpop.f32.mrb[1].mxu1  ;;  %v3742_v40 = vadd.f32 %v3741_v36, %v3740_v28  ;;  %v3743_v42 = vpop.f32.mrb[2].mxu0  ;;  %4043 = vmatpush3.bf16.msra.mxu0 %v4475_v27 }
  0xfb   :  { %v3764_v41 = vadd.f32 %v3763_v38, %v3762_v30  ;;  %v3765_v43 = vpop.f32.mrb[2].mxu1  ;;  %4065 = vmatpush3.bf16.msra.mxu1 %v4476_v32  ;;  %v3744_v46 = vpop.f32.mrb[3].mxu0  ;;  %4044 = vmatprep.subr.bf16.mxu0 %v4477_v34 }
  0xfc   :  { %v3766_v47 = vpop.f32.mrb[3].mxu1  ;;  %4066 = vmatprep.subr.bf16.mxu1 %v4478_v44 }
  0xfd   :  { %v2383_v48 = vadd.f32 %v3764_v41, %v3742_v40 }
  0xfe   :  { %4045 = vmatpush3.bf16.msra.mxu0 %v4479_v45 }
  0xff   :  { %4067 = vmatpush3.bf16.msra.mxu1 %v4480_v49  ;;  %4046 = vmatprep.subr.bf16.mxu0 %v4481_v50 }
 0x100   :  { %4068 = vmatprep.subr.bf16.mxu1 %v4482_v51 }
 0x101   :  { %22 = vsyncpa [#allocation5], 0  ;;  %v256_v56 = vpack.c.bf16 %v183_v52, %v183_v52  ;;  %v258_v57 = vpack.c.bf16 %v191_v53, %v191_v53  ;;  %v2957_v10 = vld [vmem:[%s5622_s3] sm:$0xff]  ;;  %v2958_v11 = vld [vmem:[%s5622_s3 + $0x8] sm:$0xff]  ;;  %v4509_v13 = vmov 0.0|0.0   ;;  %v4510_v26 = vmov 0.0  }
 0x102   :  { %4047 = vmatpush3.bf16.msra.mxu0 %v4483_v54  ;;  %v2959_v12 = vld [vmem:[%s5622_s3 + $0x10] sm:$0xff]  ;;  %v4185_v14 = vpack.c.bf16 %v2958_v11, %v2957_v10  ;;  %v2960_v16 = vld [vmem:[%s5622_s3 + $0x18] sm:$0xff]  ;;  %v2961_v19 = vld [vmem:[%s5622_s3 + $0x20] sm:$0xff]  ;;  %58 = vst [vmem:[#allocation2] sm:$0x1] %v4510_v26  ;;  %vm4511_vm0 = vmmov 0  }
 0x103   :  { %4069 = vmatpush3.bf16.msra.mxu1 %v4484_v55  ;;  %4184 = vmatprep.subr.bf16.mxu0 %v4509_v13  ;;  %v4188_v18 = vpack.c.bf16 %v2960_v16, %v2959_v12  ;;  %v2962_v20 = vld [vmem:[%s5622_s3 + $0x28] sm:$0xff]  ;;  %v2963_v27 = vld [vmem:[%s5622_s3 + $0x30] sm:$0xff]  ;;  %v2964_v28 = vld [vmem:[%s5622_s3 + $0x38] sm:$0xff]  ;;  %vm3129_vm1 = vcmask 1041408   ;;  %vm3051_vm2 = vcmask 64512   ;;  %vm4512_vm4 = vmmov 1  }
 0x104   :  { %v4191_v21 = vpack.c.bf16 %v2962_v20, %v2961_v19  ;;  %4145 = vmatprep.subr.mxu1 %v4510_v26  ;;  %v4194_v38 = vpack.c.bf16 %v2964_v28, %v2963_v27  ;;  %v2965_v43 = vld [vmem:[%s5622_s3 + $0x40] sm:$0xff]  ;;  %v2966_v44 = vld [vmem:[%s5622_s3 + $0x48] sm:$0xff]  ;;  %v2967_v47 = vld [vmem:[%s5622_s3 + $0x50] sm:$0xff]  ;;  %vm3125_vm6 = vcmask 80896   ;;  %vm3209_vm7 = vcmask 1043456  }
 0x105   :  { %2901 = vmatmul.mubr.bf16.vlgmr.msra.gmra.mrb[28].mxu0 %v256_v56  ;;  %v4197_v46 = vpack.c.bf16 %v2966_v44, %v2965_v43  ;;  %v2969_v50 = vld [vmem:[%s5622_s3 + $0x60] sm:$0xff]  ;;  %v2970_v51 = vld [vmem:[%s5622_s3 + $0x68] sm:$0xff]  ;;  %v2971_v53 = vld [vmem:[%s5622_s3 + $0x70] sm:$0xff]  ;;  %vm3205_vm8 = vcmask 31744   ;;  %vm3292_vm9 = vcmask 261120   ;;  %vm3445_vm10 = vcmask 0  }
 0x106   :  { %2941 = vmatmul.mubr.bf16.vlgmr.msra.gmra.mrb[28].mxu1 %v258_v57  ;;  %4186 = vmatpush3.bf16.msra.mxu0 %v4185_v14  ;;  %v4203_v52 = vpack.c.bf16 %v2970_v51, %v2969_v50  ;;  %v2972_v54 = vld [vmem:[%s5622_s3 + $0x78] sm:$0xff]  ;;  %v3050_v56 = vld [vmem:[%s5627_s8] sm:$0xff]  ;;  %vm4210_vm5 = vmpackc.low %vm3129_vm1, %vm4512_vm4 }
 0x107   :  { %4187 = vmatprep.subr.bf16.mxu0 %v4509_v13  ;;  %4142 = vmatprep.mubr.msk.f32.mxu0 %vm4511_vm0, %v4510_v26  ;;  %v4206_v55 = vpack.c.bf16 %v2972_v54, %v2971_v53  ;;  %v3044_v57 = vld [vmem:[%s5624_s5] sm:$0x1]  ;;  %s4513_s5 = smov [#allocation4]  }
 0x108   :  { %4147 = vmatprep.mubr.msk.f32.mxu1 %vm4511_vm0, %v4510_v26  ;;  %4146 = vmatpush3.msra.mxu1 %v3050_v56  ;;  %v2954_v51 = vld [vmem:[%s5621_s2] sm:$0x1] }
 0x109   :  { %4208 = vmatprep.subr.bf16.mxu1 %v4509_v13 }
 0x10a   :  { %4189 = vmatpush3.bf16.msra.mxu0 %v4188_v18 }
 0x10b   :  { %4190 = vmatprep.subr.bf16.mxu0 %v4509_v13 }
 0x10e   :  { %4192 = vmatpush3.bf16.msra.mxu0 %v4191_v21 }
 0x10f   :  { %4193 = vmatprep.subr.bf16.mxu0 %v4509_v13 }
 0x112   :  { %4195 = vmatpush3.bf16.msra.mxu0 %v4194_v38 }
 0x113   :  { %4196 = vmatprep.subr.bf16.mxu0 %v4509_v13 }
 0x116   :  { %4198 = vmatpush3.bf16.msra.mxu0 %v4197_v46 }
 0x117   :  { %4199 = vmatprep.subr.bf16.mxu0 %v4509_v13 }
 0x118   :  { %v3784_v15 = vpop.f32.mrb[4].mxu0 }
 0x119   :  { %v3806_v17 = vpop.f32.mrb[4].mxu1  ;;  %v3785_v58 = vpop.f32.mrb[5].mxu0 }
 0x11a   :  { %v3807_v59 = vpop.f32.mrb[5].mxu1  ;;  %v3786_v60 = vadd.f32 %v3785_v58, %v3784_v15  ;;  %v3787_v62 = vpop.f32.mrb[6].mxu0  ;;  %v3048_v15 = vld [vmem:[%s5626_s7] sm:$0xff]  ;;  %v3049_v58 = vld [vmem:[%s5626_s7 + $0x8] sm:$0x3]  ;;  %s3453_s7 = sshll.u32 %s4513_s5, 4  ;;  %s3454_s7 = int_to_ptr.vmem [resolvable:$true] %s3453_s7 }
 0x11b   :  { %v3808_v61 = vadd.f32 %v3807_v59, %v3806_v17  ;;  %v3809_v63 = vpop.f32.mrb[6].mxu1  ;;  %v3788_v0 = vpop.f32.mrb[7].mxu0  ;;  %v3045_v17 = vand.u32 2147483647, %v3044_v57  ;;  %v4209_v59 = vpack.c.bf16 %v3049_v58, %v3048_v15  ;;  %s4489_s8 = scalar_lea.vmem %s3454_s7, 32  ;;  %p4490_p1 = scmp.lt.s32.totalorder %s3454_s7, %s3454_s7 }
 0x11c   :  { %v3810_v1 = vpop.f32.mrb[7].mxu1  ;;  %v2423_v2 = vadd.f32 %v3786_v60, %v2383_v48  ;;  %v2968_v48 = vld [vmem:[%s5622_s3 + $0x58] sm:$0xff] }
 0x11d   :  { %v4200_v49 = vpack.c.bf16 %v2968_v48, %v2967_v47  ;;  %vm3046_vm3 = vcmp.eq.f32.partialorder %v3045_v17, inf  ;;  %v59_v48 = vld [vmem:[#allocation2] sm:$0x1] }
 0x11e   :  { %v2463_v29 = vadd.f32 %v3808_v61, %v2423_v2  ;;  %v3047_v60 = vsel %vm3046_vm3, 100000.0, %v3044_v57  ;;  %v2973_v57 = vld [vmem:[%s5623_s4] sm:$0x1] }
 0x11f   :  { %4201 = vmatpush3.bf16.msra.mxu0 %v4200_v49  ;;  %4148 = vmatmul.mubr.msk.f32.vlgmr.msra.gmra.mrb[32].mxu1 %vm3051_vm2, %v3047_v60  ;;  %v3203_v60 = vld [vmem:[%s5625_s6] sm:$0x1] }
 0x120   :  { %4202 = vmatprep.subr.bf16.mxu0 %v4509_v13  ;;  %4211 = vmatpush3.bf16.msk.msra.mxu1 %vm4210_vm5, %v4209_v59  ;;  %v3204_v59 = vld [vmem:[%s5628_s9] sm:$0xf] }
 0x121   :  { %4154 = vmatprep.mubr.msk.f32.mxu1 %vm4511_vm0, %v4510_v26  ;;  %4157 = vmatprep.subr.mxu1 %v4510_v26 }
 0x123   :  { %4204 = vmatpush3.bf16.msra.mxu0 %v4203_v52 }
 0x124   :  { %4205 = vmatprep.subr.bf16.mxu0 %v4509_v13 }
 0x127   :  { %4207 = vmatpush3.bf16.msra.mxu0 %v4206_v55 }
 0x138   :  { %v3828_v31 = vpop.f32.mrb[8].mxu0 }
 0x139   :  { %v3850_v33 = vpop.f32.mrb[8].mxu1  ;;  %v3829_v3 = vpop.f32.mrb[9].mxu0 }
 0x13a   :  { %v3851_v4 = vpop.f32.mrb[9].mxu1  ;;  %v3830_v35 = vadd.f32 %v3829_v3, %v3828_v31  ;;  %v3831_v6 = vpop.f32.mrb[10].mxu0 }
 0x13b   :  { %v3852_v5 = vadd.f32 %v3851_v4, %v3850_v33  ;;  %v3853_v37 = vpop.f32.mrb[10].mxu1  ;;  %v3832_v39 = vpop.f32.mrb[11].mxu0 }
 0x13c   :  { %v3854_v7 = vpop.f32.mrb[11].mxu1  ;;  %v2503_v8 = vadd.f32 %v3830_v35, %v2463_v29 }
 0x13e   :  { %v2543_v9 = vadd.f32 %v3852_v5, %v2503_v8 }
 0x158   :  { %v3872_v22 = vpop.f32.mrb[12].mxu0 }
 0x159   :  { %v3894_v23 = vpop.f32.mrb[12].mxu1  ;;  %v3873_v24 = vpop.f32.mrb[13].mxu0 }
 0x15a   :  { %v3895_v25 = vpop.f32.mrb[13].mxu1  ;;  %v3874_v30 = vadd.f32 %v3873_v24, %v3872_v22  ;;  %v3875_v34 = vpop.f32.mrb[14].mxu0 }
 0x15b   :  { %v3896_v32 = vadd.f32 %v3895_v25, %v3894_v23  ;;  %v3897_v36 = vpop.f32.mrb[14].mxu1  ;;  %v3876_v40 = vpop.f32.mrb[15].mxu0 }
 0x15c   :  { %v3898_v41 = vpop.f32.mrb[15].mxu1  ;;  %v2583_v42 = vadd.f32 %v3874_v30, %v2543_v9 }
 0x15e   :  { %v2623_v45 = vadd.f32 %v3896_v32, %v2583_v42 }
 0x178   :  { %v3916_v61 = vpop.f32.mrb[16].mxu0 }
 0x179   :  { %v3938_v62 = vpop.f32.mrb[16].mxu1  ;;  %v3917_v63 = vpop.f32.mrb[17].mxu0 }
 0x17a   :  { %v3939_v0 = vpop.f32.mrb[17].mxu1  ;;  %v3918_v1 = vadd.f32 %v3917_v63, %v3916_v61  ;;  %v3919_v29 = vpop.f32.mrb[18].mxu0  ;;  %v3287_v61 = vld [vmem:[%s5630_s11] sm:$0xff] }
 0x17b   :  { %v3940_v2 = vadd.f32 %v3939_v0, %v3938_v62  ;;  %v3941_v31 = vpop.f32.mrb[18].mxu1  ;;  %v3920_v33 = vpop.f32.mrb[19].mxu0  ;;  %v3288_v62 = vld [vmem:[%s5630_s11 + $0x8] sm:$0xff]  ;;  %v3289_v0 = vld [vmem:[%s5630_s11 + $0x10] sm:$0xff] }
 0x17c   :  { %v3942_v3 = vpop.f32.mrb[19].mxu1  ;;  %v2663_v4 = vadd.f32 %v3918_v1, %v2623_v45  ;;  %v4213_v63 = vpack.c.bf16 %v3288_v62, %v3287_v61  ;;  %v3290_v1 = vld [vmem:[%s5630_s11 + $0x18] sm:$0xff] }
 0x17e   :  { %v2703_v35 = vadd.f32 %v3940_v2, %v2663_v4  ;;  %v4216_v2 = vpack.c.bf16 %v3290_v1, %v3289_v0  ;;  %v3284_v4 = vld [vmem:[%s5629_s10] sm:$0x1] }
 0x198   :  { %v3960_v5 = vpop.f32.mrb[20].mxu0 }
 0x199   :  { %v3982_v6 = vpop.f32.mrb[20].mxu1  ;;  %v3961_v37 = vpop.f32.mrb[21].mxu0 }
 0x19a   :  { %v3983_v39 = vpop.f32.mrb[21].mxu1  ;;  %v3962_v7 = vadd.f32 %v3961_v37, %v3960_v5  ;;  %v3963_v9 = vpop.f32.mrb[22].mxu0  ;;  %v3368_v37 = vld [vmem:[%s5632_s13 + $0x8] sm:$0xff] }
 0x19b   :  { %v3984_v8 = vadd.f32 %v3983_v39, %v3982_v6  ;;  %v3985_v10 = vpop.f32.mrb[22].mxu1  ;;  %v3964_v11 = vpop.f32.mrb[23].mxu0  ;;  %v3367_v6 = vld [vmem:[%s5632_s13] sm:$0xff]  ;;  %v3369_v9 = vld [vmem:[%s5632_s13 + $0x10] sm:$0xff] }
 0x19c   :  { %v3986_v12 = vpop.f32.mrb[23].mxu1  ;;  %v2743_v14 = vadd.f32 %v3962_v7, %v2703_v35  ;;  %v4219_v7 = vpack.c.bf16 %v3368_v37, %v3367_v6  ;;  %v3370_v10 = vld [vmem:[%s5632_s13 + $0x18] sm:$0xff]  ;;  %s4485_s13 = scalar_lea.vmem %s3454_s7, 16 }
 0x19d   :  { %v4222_v11 = vpack.c.bf16 %v3370_v10, %v3369_v9  ;;  %v3291_v12 = vld [vmem:[%s5631_s12] sm:$0x1]  ;;  %p4486_p0 = scmp.ne.s32.totalorder %s3454_s7, %s4485_s13  ;;  %p4491_p2 = scmp.lt.s32.totalorder %s4489_s8, %s4485_s13 }
 0x19e   :  { %v2783_v16 = vadd.f32 %v3984_v8, %v2743_v14 }
 0x19f   :  { %p4492_p3 = por %p4491_p2, %p4490_p1 }
 0x1a1   :  { %p4493_p4 = pnand %p4492_p3, %p4486_p0 }
 0x1b8   :  { %v4004_v18 = vpop.f32.mrb[24].mxu0 }
 0x1b9   :  { %v4026_v19 = vpop.f32.mrb[24].mxu1  ;;  %v4005_v20 = vpop.f32.mrb[25].mxu0 }
 0x1ba   :  { %v4027_v21 = vpop.f32.mrb[25].mxu1  ;;  %v4006_v22 = vadd.f32 %v4005_v20, %v4004_v18  ;;  %v4007_v24 = vpop.f32.mrb[26].mxu0 }
 0x1bb   :  { %v4028_v23 = vadd.f32 %v4027_v21, %v4026_v19  ;;  %v4029_v25 = vpop.f32.mrb[26].mxu1  ;;  %v4008_v27 = vpop.f32.mrb[27].mxu0 }
 0x1bc   :  { %v4030_v28 = vpop.f32.mrb[27].mxu1  ;;  %v2823_v30 = vadd.f32 %v4006_v22, %v2783_v16 }
 0x1be   :  { %v2863_v32 = vadd.f32 %v4028_v23, %v2823_v30 }
 0x1d8   :  { %v4048_v34 = vpop.f32.mrb[28].mxu0 }
 0x1d9   :  { %v4070_v36 = vpop.f32.mrb[28].mxu1  ;;  %v4049_v38 = vpop.f32.mrb[29].mxu0 }
 0x1da   :  { %v4071_v40 = vpop.f32.mrb[29].mxu1  ;;  %v4050_v41 = vadd.f32 %v4049_v38, %v4048_v34  ;;  %v4051_v43 = vpop.f32.mrb[30].mxu0 }
 0x1db   :  { %v4072_v42 = vadd.f32 %v4071_v40, %v4070_v36  ;;  %v4073_v44 = vpop.f32.mrb[30].mxu1  ;;  %v4052_v45 = vpop.f32.mrb[31].mxu0 }
 0x1dc   :  { %v4074_v46 = vpop.f32.mrb[31].mxu1  ;;  %v2903_v47 = vadd.f32 %v4050_v41, %v2863_v32 }
 0x1de   :  { %v2943_v49 = vadd.f32 %v4072_v42, %v2903_v47 }
 0x1e0   :  { %v2948_v50 = vadd.f32 %v2943_v49, %v59_v48 }
 0x1e2   :  { %2949 = vst [vmem:[#allocation2] sm:$0x1] %v2948_v50 }
 0x1e9   :  { %v2953_v52 = vld [vmem:[#allocation2] sm:$0x1] }
 0x1ea   :  { %v2955_v53 = vadd.f32 %v2954_v51, %v2953_v52 }
 0x1ec   :  { %v2956_v54 = vmax.f32 %v2955_v53, 0.0 }
 0x1ee   :  { %4143 = vmatmul.mubr.f32.vlgmr.msra.gmra.mrb[32].mxu0 %v2956_v54 }
 0x1f2   :  { %v3121_v55 = vpop.f32.mrb[32].mxu1 }
 0x1f3   :  { %v4149_v56 = vpop.f32.mrb[33].mxu1 }
 0x2c1   :  { %v3040_v15 = vpop.f32.mrb[32].mxu0 }
 0x2c2   :  { %v3041_v17 = vadd.f32 %v3040_v15, %v2973_v57  ;;  %v4144_v58 = vpop.f32.mrb[33].mxu0 }
 0x2c4   :  { %4155 = vmatmul.mubr.msk.f32.vlgmr.msra.gmra.mrb[34].mxu1 %vm3125_vm6, %v3041_v17 }
 0x2c5   :  { %4158 = vmatpush3.msk.msra.mxu1 %vm3209_vm7, %v3204_v59  ;;  %4159 = vmatprep.mubr.msk.f32.mxu1 %vm4511_vm0, %v4510_v26 }
 0x2c6   :  { %4212 = vmatprep.subr.bf16.mxu1 %v4509_v13 }
 0x2c8   :  { %4160 = vmatmul.mubr.msk.f32.vlgmr.msra.gmra.mrb[36].mxu1 %vm3205_vm8, %v3203_v60 }
 0x2c9   :  { %4170 = vmatprep.mubr.msk.f32.mxu1 %vm4511_vm0, %v4510_v26  ;;  %4214 = vmatpush3.bf16.msra.mxu1 %v4213_v63 }
 0x2ca   :  { %4215 = vmatprep.subr.bf16.mxu1 %v4509_v13 }
 0x2cd   :  { %4217 = vmatpush3.bf16.msra.mxu1 %v4216_v2 }
 0x2ce   :  { %4218 = vmatprep.subr.bf16.mxu1 %v4509_v13 }
 0x397   :  { %v3199_v29 = vpop.f32.mrb[34].mxu1 }
 0x398   :  { %v3200_v31 = vadd.f32 %v3199_v29, %v3121_v55  ;;  %v4156_v33 = vpop.f32.mrb[35].mxu1 }
 0x39b   :  { %v3279_v3 = vpop.f32.mrb[36].mxu1 }
 0x39c   :  { %v3283_v35 = vadd.f32 %v3279_v3, %v3200_v31  ;;  %v4161_v5 = vpop.f32.mrb[37].mxu1 }
 0x39e   :  { %v3285_v39 = vadd.f32 %v3284_v4, %v3283_v35 }
 0x3a0   :  { %v3286_v8 = vmax.f32 %v3285_v39, 0.0 }
 0x3a2   :  { %4171 = vmatmul.mubr.msk.f32.vlgmr.msra.gmra.mrb[38].mxu1 %vm3292_vm9, %v3286_v8 }
 0x3a3   :  { %4220 = vmatpush3.bf16.msra.mxu1 %v4219_v7  ;;  %4181 = vmatprep.mubr.msk.f32.mxu1 %vm4511_vm0, %v4510_v26 }
 0x3a4   :  { %4221 = vmatprep.subr.bf16.mxu1 %v4509_v13  ;;  %v3371_v13 = vld [vmem:[#allocation3] sm:$0x1] }
 0x3a7   :  { %4223 = vmatpush3.bf16.msra.mxu1 %v4222_v11 }
 0x475   :  { %v3362_v14 = vpop.f32.mrb[38].mxu1 }
 0x476   :  { %v3363_v16 = vadd.f32 %v3362_v14, %v3291_v12  ;;  %v4172_v18 = vpop.f32.mrb[39].mxu1 }
 0x478   :  { %v3366_v26 = vmax.f32 %v3363_v16, 0.0 }
 0x47a   :  { %4182 = vmatmul.mubr.msk.f32.vlgmr.msra.gmra.mrb[40].mxu1 %vm3292_vm9, %v3366_v26 }
 0x54d   :  { %v3441_v19 = vpop.f32.mrb[40].mxu1 }
 0x54e   :  { %v3442_v20 = vadd.f32 %v3441_v19, %v3371_v13  ;;  %v4183_v21 = vpop.f32.mrb[41].mxu1 }
 0x550   :  { %3446 = vst.msk [vmem:[#allocation4] sm:$0x1] %vm3445_vm10, %v3442_v20 }
 0x551   :  { %4496 = shalt.err (!%p4493_p4)
}
 0x552   :  { %s4497_s27 = scalar_lea.hbm %s5634_s15, 16 }
 0x553   :  { %p4498_p5 = scmp.ne.s32.totalorder %s5634_s15, %s4497_s27  ;;  %p4501_p6 = scmp.lt.u32.totalorder %s4497_s27, %s5634_s15 }
 0x555   :  { %p4503_p7 = pnand %p4501_p6, %p4498_p5 }
 0x557   :  { %4506 = shalt.err (!%p4503_p7)
}
 0x558   :  { %3456 = dma.vmem_to_hbm [thread:$0]  %s3454_s7, 16, %s5634_s15, [#allocation5]  }
 0x559   :  { %4507 = dma.done.wait [#allocation5], 16  }
 0x55a   :  { %4508 = vsyncadd [#allocation5], 4294967280 }
 0x55b   :  { %3460 = vsyncpa [#allocation5], 1 }

</bundles_post_ra>
